<compile_context>
chip_gen: v7x
topology: tpu7x:2x2x1
jax: 0.10.0
libtpu: 0.0.40
codegen_flags: <defaults>
</compile_context>

<pallas_src>
import functools

import jax
import jax.numpy as jnp
from jax.experimental import pallas as pl
from jax.experimental.pallas import tpu as pltpu

HIDDEN = 768        # fixed by nn.Linear(768, 512)
FC1 = 512
NCLS = 2
NCLS_PAD = 128      # lane-dense padded class dim
TILE_MAX = 512      # max batch rows per grid step


def _round_up(n, m):
    return ((n + m - 1) // m) * m


def _cdiv(a, b):
    return -(-a // b)


def _elementwise_dtype():
    """bf16 elementwise on v6e/v7x (native bf16 VPU/EUP); f32 elsewhere (v5e)."""
    try:
        kind = jax.devices()[0].device_kind.lower()
    except Exception:  # pragma: no cover - defensive
        return jnp.float32
    if "v6" in kind or "v7" in kind or "7x" in kind:
        return jnp.bfloat16
    return jnp.float32


def _softplus_f32(z):
    # numerically stable softplus in f32; log(1+t) with t<=1 is fine here.
    return jnp.maximum(z, 0.0) + jnp.log(1.0 + jnp.exp(-jnp.abs(z)))


def bert_head_kernel(x_ref, wp_ref, bp_ref, w1_ref, b1_ref, w2_ref, b2_ref,
                     o_ref, *, ew_dtype):
    """Fused pooler + classification head (one batch tile).

    x_ref : (TB, 768)  bf16 masked-mean sequence representation
    wp_ref: (768, 768) bf16 pooler dense weight (in, out)
    bp_ref: (1, 768)   ew_dtype pooler bias
    w1_ref: (768, 512) bf16 fc1 weight (in, out), b1_ref: (1, 512) ew_dtype
    w2_ref: (512, 128) bf16 fc2 weight (zero-padded cols), b2_ref: (1, 128) f32
    o_ref : (TB, 128)  f32 log-probabilities (cols >= 2 are padding)
    """
    x = x_ref[...]  # bf16, already the MXU operand dtype

    # BERT pooler: dense + tanh -> 'pooler_output'
    z = jnp.dot(x, wp_ref[...], preferred_element_type=jnp.float32)
    pooled = jnp.tanh(z.astype(ew_dtype) + bp_ref[...])

    # fc1 + ReLU
    h = jnp.dot(pooled.astype(jnp.bfloat16), w1_ref[...],
                preferred_element_type=jnp.float32)
    h = jnp.maximum(h.astype(ew_dtype) + b1_ref[...], 0.0)

    # dropout(p=0.1): eval-mode identity
    # TODO(synk): training-mode dropout would use pltpu.prng_seed/prng_random_bits.

    # fc2 into lane-padded class dim (padded weight/bias columns are zeros)
    logits = jnp.dot(h.astype(jnp.bfloat16), w2_ref[...],
                     preferred_element_type=jnp.float32) + b2_ref[...]

    # 2-class closed-form LogSoftmax (dim=1), f32:
    #   out0 = -softplus(l1 - l0),  out1 = -softplus(l0 - l1)
    d = logits[:, 0:1] - logits[:, 1:2]        # (TB, 1) f32
    out0 = -_softplus_f32(-d)
    out1 = -_softplus_f32(d)

    col = jax.lax.broadcasted_iota(jnp.int32, o_ref.shape, 1)
    out = jnp.where(col == 0, out0, jnp.where(col == 1, out1, 0.0))
    o_ref[...] = out.astype(o_ref.dtype)


def bert_arch_head(x, wp, bp, w1, b1, w2p, b2p):
    """x: (B, 768) f32 -> (B, 2) f32 log-probs."""
    B = x.shape[0]
    ew_dtype = _elementwise_dtype()

    # Batch tiling: pad only to a sublane multiple, target >= 2 grid steps so
    # v7x's second TensorCore is used, cap the tile at TILE_MAX rows.
    b_pad8 = _round_up(B, 8)
    n_steps = max(_cdiv(b_pad8, TILE_MAX), 2 if b_pad8 >= 16 else 1)
    tb = _round_up(_cdiv(b_pad8, n_steps), 8)
    b_pad = _round_up(b_pad8, tb)

    # Stream x in bf16 (halves its HBM->VMEM DMA; it is the MXU operand dtype).
    x = x.astype(jnp.bfloat16)
    if b_pad != B:
        x = jnp.pad(x, ((0, b_pad - B), (0, 0)))

    # Biases for the bf16-elementwise path are cast once here (tiny arrays).
    bp = bp.astype(ew_dtype)
    b1 = b1.astype(ew_dtype)
    b2p = b2p.astype(jnp.float32)  # log-softmax math stays f32

    # Advisory cost estimate so XLA schedules surrounding ops around the kernel.
    flops = 2 * b_pad * (HIDDEN * HIDDEN + HIDDEN * FC1 + FC1 * NCLS_PAD)
    transcendentals = b_pad * (HIDDEN + 2)            # tanh row + 2 softplus terms
    bytes_accessed = (
        x.size * x.dtype.itemsize
        + b_pad * NCLS_PAD * 4
        + wp.size * wp.dtype.itemsize
        + w1.size * w1.dtype.itemsize
        + w2p.size * w2p.dtype.itemsize
        + bp.size * bp.dtype.itemsize
        + b1.size * b1.dtype.itemsize
        + b2p.size * b2p.dtype.itemsize
    )

    resident = lambda shape: pl.BlockSpec(shape, lambda i: (0, 0))

    out = pl.pallas_call(
        functools.partial(bert_head_kernel, ew_dtype=ew_dtype),
        out_shape=jax.ShapeDtypeStruct((b_pad, NCLS_PAD), jnp.float32),
        grid=(b_pad // tb,),
        in_specs=[
            pl.BlockSpec((tb, HIDDEN), lambda i: (i, 0)),   # x: batch-tiled bf16
            resident((HIDDEN, HIDDEN)),                     # pooler_w (bf16)
            resident((1, HIDDEN)),                          # pooler_b
            resident((HIDDEN, FC1)),                        # fc1_w (bf16)
            resident((1, FC1)),                             # fc1_b
            resident((FC1, NCLS_PAD)),                      # fc2_w padded (bf16)
            resident((1, NCLS_PAD)),                        # fc2_b padded (f32)
        ],
        out_specs=pl.BlockSpec((tb, NCLS_PAD), lambda i: (i, 0)),
        compiler_params=pltpu.CompilerParams(
            dimension_semantics=("parallel",)),
        cost_estimate=pl.CostEstimate(
            flops=flops,
            transcendentals=transcendentals,
            bytes_accessed=bytes_accessed),
    )(x, wp, bp, w1, b1, w2p, b2p)

    return out[:B, :NCLS]


def bert_arch_forward(sent_id, mask, params):
    """Mirrors BERT_Arch.forward(sent_id, mask) with a surrogate backbone."""
    # --- surrogate BERT backbone (glue, plain JAX) ---------------------------
    # TODO(synk): the full pretrained 12-layer BERT encoder is not translated;
    # replaced by embedding lookup + mask-weighted mean pooling.
    emb = params["word_emb"][sent_id]                      # (B, S, 768) gather
    m = mask.astype(jnp.float32)[..., None]                # (B, S, 1)
    seq_rep = (emb * m).sum(axis=1) / jnp.maximum(m.sum(axis=1), 1.0)  # (B, 768)
    # TODO(synk): the mask-weighted mean could be fused into the kernel
    # (stream (tb, S, 768) emb tiles) to skip one HBM round trip of seq_rep.

    # --- fused Pallas kernel: pooler dense+tanh, fc1, relu, fc2, log_softmax -
    return bert_arch_head(
        seq_rep,
        params["pooler_w"], params["pooler_b"],
        params["fc1_w"], params["fc1_b"],
        params["fc2_w"], params["fc2_b"],
    )


def init_params(key, vocab=32):
    ks = jax.random.split(key, 7)
    s = lambda fan_in: 1.0 / jnp.sqrt(jnp.float32(fan_in))
    # fc2 weight/bias are lane-padded to 128 output columns ONCE here (padding
    # columns are zero and never read by the closed-form log-softmax).
    fc2_w = (jax.random.normal(ks[5], (FC1, NCLS), jnp.float32) * s(FC1))
    fc2_b = jax.random.normal(ks[6], (1, NCLS), jnp.float32) * 0.01
    fc2_w_pad = jnp.zeros((FC1, NCLS_PAD), jnp.bfloat16).at[:, :NCLS].set(
        fc2_w.astype(jnp.bfloat16))
    fc2_b_pad = jnp.zeros((1, NCLS_PAD), jnp.float32).at[:, :NCLS].set(fc2_b)
    return {
        "word_emb": jax.random.normal(ks[0], (vocab, HIDDEN), jnp.float32) * 0.02,
        # Weight matrices stored in bf16 (native MXU path, half the HBM bytes);
        # biases stay f32 in the param dict (cast per-target inside the wrapper).
        # TODO(synk): int8 weights possible on v5e/v6e (fp8 on v7x) for another 2x.
        "pooler_w": (jax.random.normal(ks[1], (HIDDEN, HIDDEN), jnp.float32)
                     * s(HIDDEN)).astype(jnp.bfloat16),
        "pooler_b": jax.random.normal(ks[2], (1, HIDDEN), jnp.float32) * 0.01,
        "fc1_w": (jax.random.normal(ks[3], (HIDDEN, FC1), jnp.float32)
                  * s(HIDDEN)).astype(jnp.bfloat16),
        "fc1_b": jax.random.normal(ks[4], (1, FC1), jnp.float32) * 0.01,
        "fc2_w": fc2_w_pad,
        "fc2_b": fc2_b_pad,
    }


if __name__ == "__main__":
    key = jax.random.PRNGKey(0)
    pkey, ikey = jax.random.split(key)

    B, S, VOCAB = 2, 8, 32
    params = init_params(pkey, vocab=VOCAB)
    sent_id = jax.random.randint(ikey, (B, S), 0, VOCAB, dtype=jnp.int32)
    mask = jnp.ones((B, S), dtype=jnp.int32).at[1, 5:].set(0)  # some padding

    out = jax.block_until_ready(bert_arch_forward(sent_id, mask, params))

    # sanity: log-softmax rows must exp-sum to ~1 over the 2 real classes
    assert out.shape == (B, NCLS)
    row_sums = jnp.exp(out).sum(axis=1)
    assert bool(jnp.all(jnp.abs(row_sums - 1.0) < 1e-3)), row_sums
    assert bool(jnp.all(jnp.isfinite(out))), out

    print("KERNEL_OK")
</pallas_src>

<mosaic_0001>
module attributes {stable_mosaic.version = 11 : i64} {
  func.func @bert_head_kernel(%arg0: i32, %arg1: memref<8x768xbf16, #tpu.memory_space<vmem>>, %arg2: memref<768x768xbf16, #tpu.memory_space<vmem>>, %arg3: memref<1x768xf32, #tpu.memory_space<vmem>>, %arg4: memref<768x512xbf16, #tpu.memory_space<vmem>>, %arg5: memref<1x512xf32, #tpu.memory_space<vmem>>, %arg6: memref<512x128xbf16, #tpu.memory_space<vmem>>, %arg7: memref<1x128xf32, #tpu.memory_space<vmem>>, %arg8: memref<8x128xf32, #tpu.memory_space<vmem>>) attributes {dimension_semantics = [#tpu.dimension_semantics<parallel>], iteration_bounds = array<i64: 1>, scalar_prefetch = 0 : i64, scratch_operands = 0 : i64, tpu.core_type = #tpu.core_type<tc>, window_params = [{transform_indices = @transform_0, window_bounds = array<i64: 8, 768>}, {pipeline_mode = #tpu.pipeline_mode<synchronous>, transform_indices = @transform_1, window_bounds = array<i64: 768, 768>}, {pipeline_mode = #tpu.pipeline_mode<synchronous>, transform_indices = @transform_2, window_bounds = array<i64: 1, 768>}, {pipeline_mode = #tpu.pipeline_mode<synchronous>, transform_indices = @transform_3, window_bounds = array<i64: 768, 512>}, {pipeline_mode = #tpu.pipeline_mode<synchronous>, transform_indices = @transform_4, window_bounds = array<i64: 1, 512>}, {pipeline_mode = #tpu.pipeline_mode<synchronous>, transform_indices = @transform_5, window_bounds = array<i64: 512, 128>}, {pipeline_mode = #tpu.pipeline_mode<synchronous>, transform_indices = @transform_6, window_bounds = array<i64: 1, 128>}, {transform_indices = @transform_7, window_bounds = array<i64: 8, 128>}]} {
    %c0 = arith.constant 0 : index
    %c0_0 = arith.constant 0 : index
    %0 = vector.load %arg1[%c0, %c0_0] : memref<8x768xbf16, #tpu.memory_space<vmem>>, vector<8x768xbf16>
    %c0_1 = arith.constant 0 : index
    %c0_2 = arith.constant 0 : index
    %1 = vector.load %arg2[%c0_1, %c0_2] : memref<768x768xbf16, #tpu.memory_space<vmem>>, vector<768x768xbf16>
    %cst = arith.constant dense<0.000000e+00> : vector<8x768xf32>
    %2 = tpu.matmul %0, %1, %cst {dimension_numbers = #tpu.dot_dimension_numbers<[1], [0], [0], [1], [0, 0, 1, 1], [], []>} : vector<8x768xbf16>, vector<768x768xbf16>, vector<8x768xf32> -> vector<8x768xf32>
    %c0_3 = arith.constant 0 : index
    %c0_4 = arith.constant 0 : index
    %3 = vector.load %arg3[%c0_3, %c0_4] : memref<1x768xf32, #tpu.memory_space<vmem>>, vector<1x768xf32>
    %4 = vector.broadcast %3 : vector<1x768xf32> to vector<8x768xf32>
    %5 = arith.addf %2, %4 : vector<8x768xf32>
    %6 = math.tanh %5 : vector<8x768xf32>
    %7 = arith.truncf %6 : vector<8x768xf32> to vector<8x768xbf16>
    %c0_5 = arith.constant 0 : index
    %c0_6 = arith.constant 0 : index
    %8 = vector.load %arg4[%c0_5, %c0_6] : memref<768x512xbf16, #tpu.memory_space<vmem>>, vector<768x512xbf16>
    %cst_7 = arith.constant dense<0.000000e+00> : vector<8x512xf32>
    %9 = tpu.matmul %7, %8, %cst_7 {dimension_numbers = #tpu.dot_dimension_numbers<[1], [0], [0], [1], [0, 0, 1, 1], [], []>} : vector<8x768xbf16>, vector<768x512xbf16>, vector<8x512xf32> -> vector<8x512xf32>
    %c0_8 = arith.constant 0 : index
    %c0_9 = arith.constant 0 : index
    %10 = vector.load %arg5[%c0_8, %c0_9] : memref<1x512xf32, #tpu.memory_space<vmem>>, vector<1x512xf32>
    %11 = vector.broadcast %10 : vector<1x512xf32> to vector<8x512xf32>
    %12 = arith.addf %9, %11 : vector<8x512xf32>
    %cst_10 = arith.constant 0.000000e+00 : f32
    %13 = vector.broadcast %cst_10 : f32 to vector<8x512xf32>
    %14 = arith.maximumf %12, %13 : vector<8x512xf32>
    %15 = arith.truncf %14 : vector<8x512xf32> to vector<8x512xbf16>
    %c0_11 = arith.constant 0 : index
    %c0_12 = arith.constant 0 : index
    %16 = vector.load %arg6[%c0_11, %c0_12] : memref<512x128xbf16, #tpu.memory_space<vmem>>, vector<512x128xbf16>
    %cst_13 = arith.constant dense<0.000000e+00> : vector<8x128xf32>
    %17 = tpu.matmul %15, %16, %cst_13 {dimension_numbers = #tpu.dot_dimension_numbers<[1], [0], [0], [1], [0, 0, 1, 1], [], []>} : vector<8x512xbf16>, vector<512x128xbf16>, vector<8x128xf32> -> vector<8x128xf32>
    %c0_14 = arith.constant 0 : index
    %c0_15 = arith.constant 0 : index
    %18 = vector.load %arg7[%c0_14, %c0_15] : memref<1x128xf32, #tpu.memory_space<vmem>>, vector<1x128xf32>
    %19 = vector.broadcast %18 : vector<1x128xf32> to vector<8x128xf32>
    %20 = arith.addf %17, %19 : vector<8x128xf32>
    %21 = vector.extract_strided_slice %20 {offsets = [0, 0], sizes = [8, 1], strides = [1, 1]} : vector<8x128xf32> to vector<8x1xf32>
    %22 = vector.extract_strided_slice %20 {offsets = [0, 1], sizes = [8, 1], strides = [1, 1]} : vector<8x128xf32> to vector<8x1xf32>
    %23 = arith.subf %21, %22 : vector<8x1xf32>
    %cst_16 = arith.constant 0.000000e+00 : f32
    %24 = vector.broadcast %cst_16 : f32 to vector<8x1xf32>
    %25 = arith.subf %24, %23 : vector<8x1xf32>
    %cst_17 = arith.constant 0.000000e+00 : f32
    %26 = vector.broadcast %cst_17 : f32 to vector<8x1xf32>
    %27 = arith.maximumf %25, %26 : vector<8x1xf32>
    %28 = math.absf %25 : vector<8x1xf32>
    %cst_18 = arith.constant 0.000000e+00 : f32
    %29 = vector.broadcast %cst_18 : f32 to vector<8x1xf32>
    %30 = arith.subf %29, %28 : vector<8x1xf32>
    %31 = math.exp %30 : vector<8x1xf32>
    %cst_19 = arith.constant 1.000000e+00 : f32
    %32 = vector.broadcast %cst_19 : f32 to vector<8x1xf32>
    %33 = arith.addf %32, %31 : vector<8x1xf32>
    %34 = math.log %33 : vector<8x1xf32>
    %35 = arith.addf %27, %34 : vector<8x1xf32>
    %cst_20 = arith.constant 0.000000e+00 : f32
    %36 = vector.broadcast %cst_20 : f32 to vector<8x1xf32>
    %37 = arith.subf %36, %35 : vector<8x1xf32>
    %cst_21 = arith.constant 0.000000e+00 : f32
    %38 = vector.broadcast %cst_21 : f32 to vector<8x1xf32>
    %39 = arith.maximumf %23, %38 : vector<8x1xf32>
    %40 = math.absf %23 : vector<8x1xf32>
    %cst_22 = arith.constant 0.000000e+00 : f32
    %41 = vector.broadcast %cst_22 : f32 to vector<8x1xf32>
    %42 = arith.subf %41, %40 : vector<8x1xf32>
    %43 = math.exp %42 : vector<8x1xf32>
    %cst_23 = arith.constant 1.000000e+00 : f32
    %44 = vector.broadcast %cst_23 : f32 to vector<8x1xf32>
    %45 = arith.addf %44, %43 : vector<8x1xf32>
    %46 = math.log %45 : vector<8x1xf32>
    %47 = arith.addf %39, %46 : vector<8x1xf32>
    %cst_24 = arith.constant 0.000000e+00 : f32
    %48 = vector.broadcast %cst_24 : f32 to vector<8x1xf32>
    %49 = arith.subf %48, %47 : vector<8x1xf32>
    %50 = tpu.iota {dimensions = array<i32: 1>} : vector<8x128xi32>
    %c0_i32 = arith.constant 0 : i32
    %51 = vector.broadcast %c0_i32 : i32 to vector<8x128xi32>
    %52 = arith.cmpi eq, %50, %51 : vector<8x128xi32>
    %c1_i32 = arith.constant 1 : i32
    %53 = vector.broadcast %c1_i32 : i32 to vector<8x128xi32>
    %54 = arith.cmpi eq, %50, %53 : vector<8x128xi32>
    %cst_25 = arith.constant 0.000000e+00 : f32
    %55 = vector.shape_cast %49 : vector<8x1xf32> to vector<8x1xf32>
    %56 = vector.broadcast %55 : vector<8x1xf32> to vector<8x128xf32>
    %57 = vector.broadcast %cst_25 : f32 to vector<8x128xf32>
    %58 = arith.select %54, %56, %57 : vector<8x128xi1>, vector<8x128xf32>
    %59 = vector.shape_cast %37 : vector<8x1xf32> to vector<8x1xf32>
    %60 = vector.broadcast %59 : vector<8x1xf32> to vector<8x128xf32>
    %61 = arith.select %52, %60, %58 : vector<8x128xi1>, vector<8x128xf32>
    %c0_26 = arith.constant 0 : index
    %c0_27 = arith.constant 0 : index
    %62 = vector.load %arg8[%c0_26, %c0_27] : memref<8x128xf32, #tpu.memory_space<vmem>>, vector<8x128xf32>
    tpu.vector_store %arg8[%c0_26, %c0_27], %61 {strides = array<i32>} : memref<8x128xf32, #tpu.memory_space<vmem>>, vector<8x128xf32>,
    return
  }
  func.func @transform_0(%arg0: i32) -> (i32, i32) {
    %c0_i32 = arith.constant 0 : i32
    %c0_i32_0 = arith.constant 0 : i32
    return %arg0, %c0_i32 : i32, i32
  }
  func.func @transform_1(%arg0: i32) -> (i32, i32) {
    %c0_i32 = arith.constant 0 : i32
    %c0_i32_0 = arith.constant 0 : i32
    %c0_i32_1 = arith.constant 0 : i32
    return %c0_i32, %c0_i32_0 : i32, i32
  }
  func.func @transform_2(%arg0: i32) -> (i32, i32) {
    %c0_i32 = arith.constant 0 : i32
    %c0_i32_0 = arith.constant 0 : i32
    %c0_i32_1 = arith.constant 0 : i32
    return %c0_i32, %c0_i32_0 : i32, i32
  }
  func.func @transform_3(%arg0: i32) -> (i32, i32) {
    %c0_i32 = arith.constant 0 : i32
    %c0_i32_0 = arith.constant 0 : i32
    %c0_i32_1 = arith.constant 0 : i32
    return %c0_i32, %c0_i32_0 : i32, i32
  }
  func.func @transform_4(%arg0: i32) -> (i32, i32) {
    %c0_i32 = arith.constant 0 : i32
    %c0_i32_0 = arith.constant 0 : i32
    %c0_i32_1 = arith.constant 0 : i32
    return %c0_i32, %c0_i32_0 : i32, i32
  }
  func.func @transform_5(%arg0: i32) -> (i32, i32) {
    %c0_i32 = arith.constant 0 : i32
    %c0_i32_0 = arith.constant 0 : i32
    %c0_i32_1 = arith.constant 0 : i32
    return %c0_i32, %c0_i32_0 : i32, i32
  }
  func.func @transform_6(%arg0: i32) -> (i32, i32) {
    %c0_i32 = arith.constant 0 : i32
    %c0_i32_0 = arith.constant 0 : i32
    %c0_i32_1 = arith.constant 0 : i32
    return %c0_i32, %c0_i32_0 : i32, i32
  }
  func.func @transform_7(%arg0: i32) -> (i32, i32) {
    %c0_i32 = arith.constant 0 : i32
    %c0_i32_0 = arith.constant 0 : i32
    return %arg0, %c0_i32 : i32, i32
  }
}

</mosaic_0001>

<bundles_post_ra>
// kernel: tpu_custom_call.1
= control target key start
LH: loop header
LB: loop body
LE: loop exit
PB: predicated region body
PF: predicated region fallthrough
CT: control target
= control target key end

     0   :  { %12 = vsyncpa [#allocation3], 0  ;;  %s5933_s0 = inlined_call_operand.hbm [shape: bf16[8,768], index: 0, kind: input, shape index: {}]   ;;  %s5934_s1 = inlined_call_operand.hbm [shape: bf16[768,768], index: 1, kind: input, shape index: {}]   ;;  %s5935_s2 = inlined_call_operand.hbm [shape: f32[1,768], index: 2, kind: input, shape index: {}]   ;;  %s5936_s3 = inlined_call_operand.hbm [shape: bf16[768,512], index: 3, kind: input, shape index: {}]   ;;  %s5937_s4 = inlined_call_operand.hbm [shape: f32[1,512], index: 4, kind: input, shape index: {}]   ;;  %s5938_s5 = inlined_call_operand.hbm [shape: bf16[512,128], index: 5, kind: input, shape index: {}]   ;;  %s5939_s6 = inlined_call_operand.hbm [shape: f32[1,128], index: 6, kind: input, shape index: {}]   ;;  %s5940_s7 = inlined_call_operand.hbm [shape: f32[8,128], index: 7, kind: output, shape index: {}]  }
   0x1   :  { %13 = vsyncpa [#allocation6], 0 }
   0x2   :  { %14 = vsyncpa [#allocation9], 0 }
   0x3   :  { %15 = vsyncpa [#allocation12], 0 }
   0x4   :  { %16 = vsyncpa [#allocation4], 0  ;;  %s5705_s24 = smov [#allocation5]   ;;  %s5519_s28 = scalar_lea.hbm %s5934_s1, 36864 }
   0x5   :  { %s32_s25 = sshll.u32 %s5705_s24, 4  ;;  %p5520_p0 = scmp.ne.s32.totalorder %s5934_s1, %s5519_s28  ;;  %s33_s25 = int_to_ptr.vmem [resolvable:$true] %s32_s25 }
   0x6   :  { %p5523_p1 = scmp.lt.u32.totalorder %s5519_s28, %s5934_s1 }
   0x8   :  { %p5525_p2 = pnand %p5523_p1, %p5520_p0 }
   0xa   :  { %5528 = shalt.err (!%p5525_p2)
}
   0xb   :  { %s5529_s10 = scalar_lea.vmem %s33_s25, 36864  ;;  %p5534_p4 = scmp.lt.s32.totalorder %s33_s25, %s33_s25 }
   0xc   :  { %p5530_p3 = scmp.ne.s32.totalorder %s33_s25, %s5529_s10  ;;  %p5535_p5 = scmp.lt.s32.totalorder %s5529_s10, %s5529_s10 }
   0xe   :  { %p5536_p6 = por %p5535_p5, %p5534_p4 }
  0x10   :  { %p5537_p7 = pnand %p5536_p6, %p5530_p3 }
  0x12   :  { %5540 = shalt.err (!%p5537_p7)
}
  0x13   :  { %s5706_s11 = smov 384   ;;  %s5707_s12 = smov 24  }
  0x14   :  { %38 = dma.hbm_to_vmem [thread:$0]  %s5934_s1, 36864, %s33_s25, [#allocation6], %s5706_s11, %s5706_s11, %s5707_s12  }
  0x15   :  { %s5708_s15 = smov [#allocation8]   ;;  %s5541_s19 = scalar_lea.hbm %s5936_s3, 24576 }
  0x16   :  { %s54_s16 = sshll.u32 %s5708_s15, 4  ;;  %p5542_p8 = scmp.ne.s32.totalorder %s5936_s3, %s5541_s19  ;;  %s55_s16 = int_to_ptr.vmem [resolvable:$true] %s54_s16 }
  0x17   :  { %p5545_p9 = scmp.lt.u32.totalorder %s5541_s19, %s5936_s3 }
  0x19   :  { %p5547_p10 = pnand %p5545_p9, %p5542_p8 }
  0x1b   :  { %5550 = shalt.err (!%p5547_p10)
}
  0x1c   :  { %s5551_s24 = scalar_lea.vmem %s55_s16, 24576  ;;  %p5556_p12 = scmp.lt.s32.totalorder %s55_s16, %s55_s16 }
  0x1d   :  { %p5552_p11 = scmp.ne.s32.totalorder %s55_s16, %s5551_s24  ;;  %p5557_p13 = scmp.lt.s32.totalorder %s5551_s24, %s5551_s24 }
  0x1f   :  { %p5558_p0 = por %p5557_p13, %p5556_p12 }
  0x21   :  { %p5559_p1 = pnand %p5558_p0, %p5552_p11 }
  0x23   :  { %5562 = shalt.err (!%p5559_p1)
}
  0x24   :  { %s5709_s1 = smov 256   ;;  %s5710_s25 = smov 16  }
  0x25   :  { %60 = dma.hbm_to_vmem [thread:$0]  %s5936_s3, 24576, %s55_s16, [#allocation9], %s5709_s1, %s5709_s1, %s5710_s25  }
  0x26   :  { %s5711_s28 = smov [#allocation11]   ;;  %s5563_s9 = scalar_lea.hbm %s5938_s5, 4096 }
  0x27   :  { %s76_s29 = sshll.u32 %s5711_s28, 4  ;;  %p5564_p2 = scmp.ne.s32.totalorder %s5938_s5, %s5563_s9  ;;  %s77_s29 = int_to_ptr.vmem [resolvable:$true] %s76_s29 }
  0x28   :  { %p5567_p3 = scmp.lt.u32.totalorder %s5563_s9, %s5938_s5 }
  0x2a   :  { %p5569_p4 = pnand %p5567_p3, %p5564_p2 }
  0x2c   :  { %5572 = shalt.err (!%p5569_p4)
}
  0x2d   :  { %s5573_s14 = scalar_lea.vmem %s77_s29, 4096  ;;  %p5578_p6 = scmp.lt.s32.totalorder %s77_s29, %s77_s29 }
  0x2e   :  { %p5574_p5 = scmp.ne.s32.totalorder %s77_s29, %s5573_s14  ;;  %p5579_p7 = scmp.lt.s32.totalorder %s5573_s14, %s5573_s14 }
  0x30   :  { %p5580_p8 = por %p5579_p7, %p5578_p6 }
  0x32   :  { %p5581_p9 = pnand %p5580_p8, %p5574_p5 }
  0x34   :  { %5584 = shalt.err (!%p5581_p9)
}
  0x35   :  { %s5712_s3 = smov 64   ;;  %s5713_s15 = smov 4  }
  0x36   :  { %82 = dma.hbm_to_vmem [thread:$0]  %s5938_s5, 4096, %s77_s29, [#allocation12], %s5712_s3, %s5712_s3, %s5713_s15  }
  0x37   :  { %s5714_s18 = smov [#allocation2]   ;;  %s5715_s20 = smov [#allocation7]  }
  0x38   :  { %s23_s19 = sshll.u32 %s5714_s18, 4  ;;  %s45_s21 = sshll.u32 %s5715_s20, 4  ;;  %s24_s19 = int_to_ptr.vmem [resolvable:$true] %s23_s19  ;;  %s46_s21 = int_to_ptr.vmem [resolvable:$true] %s45_s21 }
  0x39   :  { %s5585_s24 = scalar_lea.hbm %s5933_s0, 384 }
  0x3a   :  { %p5586_p10 = scmp.ne.s32.totalorder %s5933_s0, %s5585_s24  ;;  %p5589_p11 = scmp.lt.u32.totalorder %s5585_s24, %s5933_s0 }
  0x3c   :  { %p5591_p12 = pnand %p5589_p11, %p5586_p10 }
  0x3e   :  { %5594 = shalt.err (!%p5591_p12)
}
  0x3f   :  { %s5595_s5 = scalar_lea.vmem %s24_s19, 384  ;;  %p5600_p0 = scmp.lt.s32.totalorder %s24_s19, %s24_s19 }
  0x40   :  { %p5596_p13 = scmp.ne.s32.totalorder %s24_s19, %s5595_s5  ;;  %p5601_p1 = scmp.lt.s32.totalorder %s5595_s5, %s5595_s5 }
  0x42   :  { %p5602_p2 = por %p5601_p1, %p5600_p0 }
  0x44   :  { %p5603_p3 = pnand %p5602_p2, %p5596_p13 }
  0x46   :  { %5606 = shalt.err (!%p5603_p3)
}
  0x47   :  { %26 = dma.hbm_to_vmem [thread:$0]  %s5933_s0, 384, %s24_s19, [#allocation3]  }
  0x48   :  { %s5607_s9 = scalar_lea.hbm %s5935_s2, 96 }
  0x49   :  { %p5608_p4 = scmp.ne.s32.totalorder %s5935_s2, %s5607_s9  ;;  %p5611_p5 = scmp.lt.u32.totalorder %s5607_s9, %s5935_s2 }
  0x4b   :  { %p5613_p6 = pnand %p5611_p5, %p5608_p4 }
  0x4d   :  { %5616 = shalt.err (!%p5613_p6)
}
  0x4e   :  { %s5617_s14 = scalar_lea.vmem %s46_s21, 96  ;;  %p5622_p8 = scmp.lt.s32.totalorder %s46_s21, %s46_s21 }
  0x4f   :  { %p5618_p7 = scmp.ne.s32.totalorder %s46_s21, %s5617_s14  ;;  %p5623_p9 = scmp.lt.s32.totalorder %s5617_s14, %s5617_s14 }
  0x51   :  { %p5624_p10 = por %p5623_p9, %p5622_p8 }
  0x53   :  { %p5625_p11 = pnand %p5624_p10, %p5618_p7 }
  0x55   :  { %5628 = shalt.err (!%p5625_p11)
}
  0x56   :  { %48 = dma.hbm_to_vmem [thread:$0]  %s5935_s2, 96, %s46_s21, [#allocation6]  }
  0x57   :  { %s5716_s15 = smov [#allocation10]   ;;  %s5717_s17 = smov [#allocation13]  }
  0x58   :  { %s67_s16 = sshll.u32 %s5716_s15, 4  ;;  %s89_s18 = sshll.u32 %s5717_s17, 4  ;;  %s68_s16 = int_to_ptr.vmem [resolvable:$true] %s67_s16  ;;  %s90_s18 = int_to_ptr.vmem [resolvable:$true] %s89_s18 }
  0x59   :  { %s5629_s22 = scalar_lea.hbm %s5937_s4, 64 }
  0x5a   :  { %p5630_p12 = scmp.ne.s32.totalorder %s5937_s4, %s5629_s22  ;;  %p5633_p13 = scmp.lt.u32.totalorder %s5629_s22, %s5937_s4 }
  0x5c   :  { %p5635_p0 = pnand %p5633_p13, %p5630_p12 }
  0x5e   :  { %5638 = shalt.err (!%p5635_p0)
}
  0x5f   :  { %s5639_s2 = scalar_lea.vmem %s68_s16, 64  ;;  %p5644_p2 = scmp.lt.s32.totalorder %s68_s16, %s68_s16 }
  0x60   :  { %p5640_p1 = scmp.ne.s32.totalorder %s68_s16, %s5639_s2  ;;  %p5645_p3 = scmp.lt.s32.totalorder %s5639_s2, %s5639_s2 }
  0x62   :  { %p5646_p4 = por %p5645_p3, %p5644_p2 }
  0x64   :  { %p5647_p5 = pnand %p5646_p4, %p5640_p1 }
  0x66   :  { %5650 = shalt.err (!%p5647_p5)
}
  0x67   :  { %70 = dma.hbm_to_vmem [thread:$0]  %s5937_s4, 64, %s68_s16, [#allocation9]  }
  0x68   :  { %s5651_s28 = scalar_lea.hbm %s5939_s6, 16 }
  0x69   :  { %p5652_p6 = scmp.ne.s32.totalorder %s5939_s6, %s5651_s28  ;;  %p5655_p7 = scmp.lt.u32.totalorder %s5651_s28, %s5939_s6 }
  0x6b   :  { %p5657_p8 = pnand %p5655_p7, %p5652_p6 }
  0x6d   :  { %5660 = shalt.err (!%p5657_p8)
}
  0x6e   :  { %s5661_s10 = scalar_lea.vmem %s90_s18, 16  ;;  %s5665_s11 = scalar_lea.vmem %s90_s18, 32 }
  0x6f   :  { %p5662_p9 = scmp.ne.s32.totalorder %s90_s18, %s5661_s10  ;;  %p5666_p10 = scmp.lt.s32.totalorder %s90_s18, %s90_s18 }
  0x70   :  { %p5667_p11 = scmp.lt.s32.totalorder %s5665_s11, %s5661_s10 }
  0x72   :  { %p5668_p12 = por %p5667_p11, %p5666_p10 }
  0x74   :  { %p5669_p13 = pnand %p5668_p12, %p5662_p9 }
  0x76   :  { %5672 = shalt.err (!%p5669_p13)
}
  0x77   :  { %92 = dma.hbm_to_vmem [thread:$0]  %s5939_s6, 16, %s90_s18, [#allocation12]  }
  0x78   :  { %5695 = dma.done.wait [#allocation3], 384  }
  0x79   :  { %5696 = vsyncadd [#allocation3], 4294966912 }
  0x7a   :  { %5697 = dma.done.wait [#allocation6], 36960  }
  0x7b   :  { %5698 = vsyncadd [#allocation6], 4294930336 }
  0x7c   :  { %5699 = dma.done.wait [#allocation9], 24640  }
  0x7d   :  { %5700 = vsyncadd [#allocation9], 4294942656 }
  0x7e   :  { %5701 = dma.done.wait [#allocation12], 4112  }
  0x7f   :  { %5702 = vsyncadd [#allocation12], 4294963184  ;;  %v4741_v0 = vld [vmem:[#allocation5 + $0x4] ss:$24 sps:$4 sm:$0xff]   ;;  %v4745_v2 = vld [vmem:[#allocation5] ss:$24 sps:$4 sm:$0xff]  }
  0x80   :  { %v4743_v1 = vld [vmem:[#allocation5 + $0x304] ss:$24 sps:$4 sm:$0xff]   ;;  %1899 = vmatprep.subr.bf16.mxu1 %v4741_v0  ;;  %v4746_v3 = vld [vmem:[#allocation5 + $0x300] ss:$24 sps:$4 sm:$0xff]   ;;  %v4747_v4 = vld [vmem:[#allocation5 + $0x34] ss:$24 sps:$4 sm:$0xff]  }
  0x81   :  { %1940 = vmatprep.subr.bf16.mxu0 %v4743_v1  ;;  %1900 = vmatpush1.bf16.msra.mxu1 %v4745_v2  ;;  %v4749_v5 = vld [vmem:[#allocation5 + $0x334] ss:$24 sps:$4 sm:$0xff]   ;;  %v4751_v6 = vld [vmem:[#allocation5 + $0x30] ss:$24 sps:$4 sm:$0xff]   ;;  %v4753_v8 = vld [vmem:[#allocation5 + $0x64] ss:$24 sps:$4 sm:$0xff]  }
  0x82   :  { %1941 = vmatpush1.bf16.msra.mxu0 %v4746_v3  ;;  %1901 = vmatprep.subr.bf16.mxu1 %v4747_v4  ;;  %v4752_v7 = vld [vmem:[#allocation5 + $0x330] ss:$24 sps:$4 sm:$0xff]   ;;  %v4755_v9 = vld [vmem:[#allocation5 + $0x364] ss:$24 sps:$4 sm:$0xff]   ;;  %v4757_v10 = vld [vmem:[#allocation5 + $0x60] ss:$24 sps:$4 sm:$0xff]  }
  0x83   :  { %1942 = vmatprep.subr.bf16.mxu0 %v4749_v5  ;;  %v4758_v11 = vld [vmem:[#allocation5 + $0x360] ss:$24 sps:$4 sm:$0xff]   ;;  %v4759_v12 = vld [vmem:[#allocation5 + $0x94] ss:$24 sps:$4 sm:$0xff]   ;;  %v4763_v14 = vld [vmem:[#allocation5 + $0x90] ss:$24 sps:$4 sm:$0xff]  }
  0x84   :  { %v4761_v13 = vld [vmem:[#allocation5 + $0x394] ss:$24 sps:$4 sm:$0xff]   ;;  %v4764_v15 = vld [vmem:[#allocation5 + $0x390] ss:$24 sps:$4 sm:$0xff]   ;;  %v4765_v16 = vld [vmem:[#allocation5 + $0xc4] ss:$24 sps:$4 sm:$0xff]  }
  0x85   :  { %1902 = vmatpush1.bf16.msra.mxu1 %v4751_v6  ;;  %v4767_v17 = vld [vmem:[#allocation5 + $0x3c4] ss:$24 sps:$4 sm:$0xff]   ;;  %v4769_v18 = vld [vmem:[#allocation5 + $0xc0] ss:$24 sps:$4 sm:$0xff]   ;;  %v4771_v20 = vld [vmem:[#allocation5 + $0xf4] ss:$24 sps:$4 sm:$0xff]  }
  0x86   :  { %1943 = vmatpush1.bf16.msra.mxu0 %v4752_v7  ;;  %1903 = vmatprep.subr.bf16.mxu1 %v4753_v8  ;;  %v4770_v19 = vld [vmem:[#allocation5 + $0x3c0] ss:$24 sps:$4 sm:$0xff]   ;;  %v4773_v21 = vld [vmem:[#allocation5 + $0x3f4] ss:$24 sps:$4 sm:$0xff]   ;;  %v4775_v22 = vld [vmem:[#allocation5 + $0xf0] ss:$24 sps:$4 sm:$0xff]  }
  0x87   :  { %1944 = vmatprep.subr.bf16.mxu0 %v4755_v9  ;;  %v4776_v23 = vld [vmem:[#allocation5 + $0x3f0] ss:$24 sps:$4 sm:$0xff]   ;;  %v4777_v24 = vld [vmem:[#allocation5 + $0x124] ss:$24 sps:$4 sm:$0xff]   ;;  %v4781_v26 = vld [vmem:[#allocation5 + $0x120] ss:$24 sps:$4 sm:$0xff]  }
  0x88   :  { %v4779_v25 = vld [vmem:[#allocation5 + $0x424] ss:$24 sps:$4 sm:$0xff]   ;;  %v4782_v27 = vld [vmem:[#allocation5 + $0x420] ss:$24 sps:$4 sm:$0xff]   ;;  %v4783_v28 = vld [vmem:[#allocation5 + $0x154] ss:$24 sps:$4 sm:$0xff]  }
  0x89   :  { %1904 = vmatpush1.bf16.msra.mxu1 %v4757_v10  ;;  %v4785_v29 = vld [vmem:[#allocation5 + $0x454] ss:$24 sps:$4 sm:$0xff]   ;;  %v4787_v30 = vld [vmem:[#allocation5 + $0x150] ss:$24 sps:$4 sm:$0xff]   ;;  %v4789_v32 = vld [vmem:[#allocation5 + $0x184] ss:$24 sps:$4 sm:$0xff]  }
  0x8a   :  { %1945 = vmatpush1.bf16.msra.mxu0 %v4758_v11  ;;  %1905 = vmatprep.subr.bf16.mxu1 %v4759_v12  ;;  %v4788_v31 = vld [vmem:[#allocation5 + $0x450] ss:$24 sps:$4 sm:$0xff]   ;;  %v4791_v33 = vld [vmem:[#allocation5 + $0x484] ss:$24 sps:$4 sm:$0xff]   ;;  %v4793_v34 = vld [vmem:[#allocation5 + $0x180] ss:$24 sps:$4 sm:$0xff]  }
  0x8b   :  { %1946 = vmatprep.subr.bf16.mxu0 %v4761_v13  ;;  %v4794_v35 = vld [vmem:[#allocation5 + $0x480] ss:$24 sps:$4 sm:$0xff]   ;;  %v4795_v36 = vld [vmem:[#allocation5 + $0x1b4] ss:$24 sps:$4 sm:$0xff]   ;;  %v4799_v38 = vld [vmem:[#allocation5 + $0x1b0] ss:$24 sps:$4 sm:$0xff]  }
  0x8c   :  { %v4797_v37 = vld [vmem:[#allocation5 + $0x4b4] ss:$24 sps:$4 sm:$0xff]   ;;  %v4800_v39 = vld [vmem:[#allocation5 + $0x4b0] ss:$24 sps:$4 sm:$0xff]   ;;  %v4801_v40 = vld [vmem:[#allocation5 + $0x1e4] ss:$24 sps:$4 sm:$0xff]  }
  0x8d   :  { %1906 = vmatpush1.bf16.msra.mxu1 %v4763_v14  ;;  %v4803_v41 = vld [vmem:[#allocation5 + $0x4e4] ss:$24 sps:$4 sm:$0xff]   ;;  %v4805_v42 = vld [vmem:[#allocation5 + $0x1e0] ss:$24 sps:$4 sm:$0xff]   ;;  %v4807_v44 = vld [vmem:[#allocation5 + $0x214] ss:$24 sps:$4 sm:$0xff]  }
  0x8e   :  { %1947 = vmatpush1.bf16.msra.mxu0 %v4764_v15  ;;  %1907 = vmatprep.subr.bf16.mxu1 %v4765_v16  ;;  %v4806_v43 = vld [vmem:[#allocation5 + $0x4e0] ss:$24 sps:$4 sm:$0xff]   ;;  %v4809_v45 = vld [vmem:[#allocation5 + $0x514] ss:$24 sps:$4 sm:$0xff]   ;;  %v4811_v49 = vld [vmem:[#allocation5 + $0x210] ss:$24 sps:$4 sm:$0xff]  }
  0x8f   :  { %1948 = vmatprep.subr.bf16.mxu0 %v4767_v17  ;;  %v115_v46 = vld [vmem:[#allocation2] sm:$0xff]  ;;  %v116_v48 = vld [vmem:[#allocation2 + $0x8] sm:$0xff]  ;;  %v4813_v52 = vld [vmem:[#allocation5 + $0x244] ss:$24 sps:$4 sm:$0xff]   ;;  %s5718_s6 = smov 127   ;;  %s5720_s13 = smov [#allocation14]  }
  0x90   :  { %v5845_v47 = vcombine.high %v115_v46, %v115_v46  ;;  %v4812_v50 = vld [vmem:[#allocation5 + $0x510] ss:$24 sps:$4 sm:$0xff]   ;;  %v5847_v51 = vcombine.high %v116_v48, %v116_v48  ;;  %v4815_v53 = vld [vmem:[#allocation5 + $0x544] ss:$24 sps:$4 sm:$0xff]   ;;  %v4817_v54 = vld [vmem:[#allocation5 + $0x240] ss:$24 sps:$4 sm:$0xff]   ;;  %v5851_v6 = vcombine.low %v115_v46, %v115_v46  ;;  %v5853_v7 = vcombine.low %v116_v48, %v116_v48 }
  0x91   :  { %1908 = vmatpush1.bf16.msra.mxu1 %v4769_v18  ;;  %v4818_v55 = vld [vmem:[#allocation5 + $0x540] ss:$24 sps:$4 sm:$0xff]   ;;  %v4819_v56 = vld [vmem:[#allocation5 + $0x274] ss:$24 sps:$4 sm:$0xff]   ;;  %v4823_v58 = vld [vmem:[#allocation5 + $0x270] ss:$24 sps:$4 sm:$0xff]  }
  0x92   :  { %1949 = vmatpush1.bf16.msra.mxu0 %v4770_v19  ;;  %1909 = vmatprep.subr.bf16.mxu1 %v4771_v20  ;;  %v4821_v57 = vld [vmem:[#allocation5 + $0x574] ss:$24 sps:$4 sm:$0xff]   ;;  %v4824_v59 = vld [vmem:[#allocation5 + $0x570] ss:$24 sps:$4 sm:$0xff]   ;;  %v4825_v60 = vld [vmem:[#allocation5 + $0x2a4] ss:$24 sps:$4 sm:$0xff]  }
  0x93   :  { %1950 = vmatprep.subr.bf16.mxu0 %v4773_v21  ;;  %1931 = vmatprep.mubr.bf16.mxu1 %v5845_v47  ;;  %v4827_v61 = vld [vmem:[#allocation5 + $0x5a4] ss:$24 sps:$4 sm:$0xff]   ;;  %v4829_v62 = vld [vmem:[#allocation5 + $0x2a0] ss:$24 sps:$4 sm:$0xff]   ;;  %v4831_v0 = vld [vmem:[#allocation5 + $0x2d4] ss:$24 sps:$4 sm:$0xff]  }
  0x94   :  { %1972 = vmatprep.mubr.bf16.mxu0 %v5847_v51  ;;  %v4830_v63 = vld [vmem:[#allocation5 + $0x5a0] ss:$24 sps:$4 sm:$0xff]   ;;  %v4833_v1 = vld [vmem:[#allocation5 + $0x5d4] ss:$24 sps:$4 sm:$0xff]   ;;  %v4835_v2 = vld [vmem:[#allocation5 + $0x2d0] ss:$24 sps:$4 sm:$0xff]  }
  0x95   :  { %1910 = vmatpush1.bf16.msra.mxu1 %v4775_v22  ;;  %v4836_v3 = vld [vmem:[#allocation5 + $0x5d0] ss:$24 sps:$4 sm:$0xff]   ;;  %v4842_v4 = vld [vmem:[#allocation5 + $0x604] ss:$24 sps:$4 sm:$0xff]   ;;  %v4840_v8 = vld [vmem:[#allocation5 + $0x600] ss:$24 sps:$4 sm:$0xff]  }
  0x96   :  { %1951 = vmatpush1.bf16.msra.mxu0 %v4776_v23  ;;  %1911 = vmatprep.subr.bf16.mxu1 %v4777_v24  ;;  %v4845_v5 = vld [vmem:[#allocation5 + $0xc] ss:$24 sps:$4 sm:$0xff]   ;;  %v4843_v9 = vld [vmem:[#allocation5 + $0x8] ss:$24 sps:$4 sm:$0xff]   ;;  %v4852_v11 = vld [vmem:[#allocation5 + $0x3c] ss:$24 sps:$4 sm:$0xff]  }
  0x97   :  { %1952 = vmatprep.subr.bf16.mxu0 %v4779_v25  ;;  %v4849_v10 = vld [vmem:[#allocation5 + $0x634] ss:$24 sps:$4 sm:$0xff]   ;;  %v4847_v12 = vld [vmem:[#allocation5 + $0x630] ss:$24 sps:$4 sm:$0xff]   ;;  %v4855_v14 = vld [vmem:[#allocation5 + $0x664] ss:$24 sps:$4 sm:$0xff]  }
  0x98   :  { %v4850_v13 = vld [vmem:[#allocation5 + $0x38] ss:$24 sps:$4 sm:$0xff]   ;;  %v4858_v15 = vld [vmem:[#allocation5 + $0x6c] ss:$24 sps:$4 sm:$0xff]   ;;  %v4856_v17 = vld [vmem:[#allocation5 + $0x68] ss:$24 sps:$4 sm:$0xff]  }
  0x99   :  { %1912 = vmatpush1.bf16.msra.mxu1 %v4781_v26  ;;  %v4853_v16 = vld [vmem:[#allocation5 + $0x660] ss:$24 sps:$4 sm:$0xff]   ;;  %v4861_v18 = vld [vmem:[#allocation5 + $0x694] ss:$24 sps:$4 sm:$0xff]   ;;  %v4859_v20 = vld [vmem:[#allocation5 + $0x690] ss:$24 sps:$4 sm:$0xff]  }
  0x9a   :  { %1953 = vmatpush1.bf16.msra.mxu0 %v4782_v27  ;;  %1913 = vmatprep.subr.bf16.mxu1 %v4783_v28  ;;  %v4864_v19 = vld [vmem:[#allocation5 + $0x9c] ss:$24 sps:$4 sm:$0xff]   ;;  %v4862_v21 = vld [vmem:[#allocation5 + $0x98] ss:$24 sps:$4 sm:$0xff]   ;;  %v4870_v23 = vld [vmem:[#allocation5 + $0xcc] ss:$24 sps:$4 sm:$0xff]  }
  0x9b   :  { %1954 = vmatprep.subr.bf16.mxu0 %v4785_v29  ;;  %v4867_v22 = vld [vmem:[#allocation5 + $0x6c4] ss:$24 sps:$4 sm:$0xff]   ;;  %v4865_v24 = vld [vmem:[#allocation5 + $0x6c0] ss:$24 sps:$4 sm:$0xff]   ;;  %v4873_v26 = vld [vmem:[#allocation5 + $0x6f4] ss:$24 sps:$4 sm:$0xff]  }
  0x9c   :  { %v4868_v25 = vld [vmem:[#allocation5 + $0xc8] ss:$24 sps:$4 sm:$0xff]   ;;  %v4876_v27 = vld [vmem:[#allocation5 + $0xfc] ss:$24 sps:$4 sm:$0xff]   ;;  %v4874_v29 = vld [vmem:[#allocation5 + $0xf8] ss:$24 sps:$4 sm:$0xff]  }
  0x9d   :  { %1914 = vmatpush1.bf16.msra.mxu1 %v4787_v30  ;;  %v4871_v28 = vld [vmem:[#allocation5 + $0x6f0] ss:$24 sps:$4 sm:$0xff]   ;;  %v4879_v30 = vld [vmem:[#allocation5 + $0x724] ss:$24 sps:$4 sm:$0xff]   ;;  %s4100_s14 = sshll.u32 %s5720_s13, 4  ;;  %s4101_s14 = int_to_ptr.vmem [resolvable:$true] %s4100_s14 }
  0x9e   :  { %1955 = vmatpush1.bf16.msra.mxu0 %v4788_v31  ;;  %1915 = vmatprep.subr.bf16.mxu1 %v4789_v32  ;;  %v4882_v31 = vld [vmem:[#allocation5 + $0x12c] ss:$24 sps:$4 sm:$0xff]   ;;  %v5858_v32 = vld [vmem:[#allocation2 + $0x10] sm:$0xff]  ;;  %v4895_v46 = vld [vmem:[#allocation5 + $0x7b0] ss:$24 sps:$4 sm:$0xff]   ;;  %s5673_s0 = scalar_lea.vmem %s4101_s14, 128  ;;  %p5678_p1 = scmp.lt.s32.totalorder %s4101_s14, %s4101_s14 }
  0x9f   :  { %1956 = vmatprep.subr.bf16.mxu0 %v4791_v33  ;;  %v4877_v33 = vld [vmem:[#allocation5 + $0x720] ss:$24 sps:$4 sm:$0xff]   ;;  %p5674_p0 = scmp.ne.s32.totalorder %s4101_s14, %s5673_s0  ;;  %p5679_p2 = scmp.lt.s32.totalorder %s5673_s0, %s5673_s0 }
  0xa0   :  { %v4898_v48 = vld [vmem:[#allocation5 + $0x1b8] ss:$24 sps:$4 sm:$0xff]  }
  0xa1   :  { %1916 = vmatpush1.bf16.msra.mxu1 %v4793_v34  ;;  %v5862_v34 = vcombine.high %v5858_v32, %v5858_v32  ;;  %p5680_p3 = por %p5679_p2, %p5678_p1 }
  0xa2   :  { %1957 = vmatpush1.bf16.msra.mxu0 %v4794_v35  ;;  %1917 = vmatprep.subr.bf16.mxu1 %v4795_v36  ;;  %v4880_v35 = vld [vmem:[#allocation5 + $0x128] ss:$24 sps:$4 sm:$0xff]   ;;  %v4885_v36 = vld [vmem:[#allocation5 + $0x754] ss:$24 sps:$4 sm:$0xff]  }
  0xa3   :  { %1958 = vmatprep.subr.bf16.mxu0 %v4797_v37  ;;  %v4888_v37 = vld [vmem:[#allocation5 + $0x15c] ss:$24 sps:$4 sm:$0xff]   ;;  %p5681_p4 = pnand %p5680_p3, %p5674_p0 }
  0xa5   :  { %1918 = vmatpush1.bf16.msra.mxu1 %v4799_v38  ;;  %v4883_v38 = vld [vmem:[#allocation5 + $0x750] ss:$24 sps:$4 sm:$0xff]  }
  0xa6   :  { %1959 = vmatpush1.bf16.msra.mxu0 %v4800_v39  ;;  %1919 = vmatprep.subr.bf16.mxu1 %v4801_v40  ;;  %v4886_v39 = vld [vmem:[#allocation5 + $0x158] ss:$24 sps:$4 sm:$0xff]   ;;  %v4891_v40 = vld [vmem:[#allocation5 + $0x784] ss:$24 sps:$4 sm:$0xff]  }
  0xa7   :  { %1960 = vmatprep.subr.bf16.mxu0 %v4803_v41  ;;  %v4894_v41 = vld [vmem:[#allocation5 + $0x18c] ss:$24 sps:$4 sm:$0xff]  }
  0xa9   :  { %1920 = vmatpush1.bf16.msra.mxu1 %v4805_v42  ;;  %v4889_v42 = vld [vmem:[#allocation5 + $0x780] ss:$24 sps:$4 sm:$0xff]  }
  0xaa   :  { %1961 = vmatpush1.bf16.msra.mxu0 %v4806_v43  ;;  %1921 = vmatprep.subr.bf16.mxu1 %v4807_v44  ;;  %v4892_v43 = vld [vmem:[#allocation5 + $0x188] ss:$24 sps:$4 sm:$0xff]   ;;  %v4897_v44 = vld [vmem:[#allocation5 + $0x7b4] ss:$24 sps:$4 sm:$0xff]  }
  0xab   :  { %1962 = vmatprep.subr.bf16.mxu0 %v4809_v45  ;;  %v4900_v45 = vld [vmem:[#allocation5 + $0x1bc] ss:$24 sps:$4 sm:$0xff]  }
  0xad   :  { %1922 = vmatpush1.bf16.msra.mxu1 %v4811_v49  ;;  %v4903_v49 = vld [vmem:[#allocation5 + $0x7e4] ss:$24 sps:$4 sm:$0xff]  }
  0xae   :  { %1963 = vmatpush1.bf16.msra.mxu0 %v4812_v50  ;;  %1923 = vmatprep.subr.bf16.mxu1 %v4813_v52  ;;  %v4906_v50 = vld [vmem:[#allocation5 + $0x1ec] ss:$24 sps:$4 sm:$0xff]   ;;  %v4901_v52 = vld [vmem:[#allocation5 + $0x7e0] ss:$24 sps:$4 sm:$0xff]  }
  0xaf   :  { %1964 = vmatprep.subr.bf16.mxu0 %v4815_v53  ;;  %v4904_v53 = vld [vmem:[#allocation5 + $0x1e8] ss:$24 sps:$4 sm:$0xff]  }
  0xb1   :  { %1924 = vmatpush1.bf16.msra.mxu1 %v4817_v54  ;;  %v4909_v54 = vld [vmem:[#allocation5 + $0x814] ss:$24 sps:$4 sm:$0xff]  }
  0xb2   :  { %1965 = vmatpush1.bf16.msra.mxu0 %v4818_v55  ;;  %1925 = vmatprep.subr.bf16.mxu1 %v4819_v56  ;;  %v4912_v55 = vld [vmem:[#allocation5 + $0x21c] ss:$24 sps:$4 sm:$0xff]   ;;  %v4907_v56 = vld [vmem:[#allocation5 + $0x810] ss:$24 sps:$4 sm:$0xff]  }
  0xb3   :  { %1966 = vmatprep.subr.bf16.mxu0 %v4821_v57  ;;  %v4910_v57 = vld [vmem:[#allocation5 + $0x218] ss:$24 sps:$4 sm:$0xff]  }
  0xb5   :  { %1926 = vmatpush1.bf16.msra.mxu1 %v4823_v58  ;;  %v4915_v58 = vld [vmem:[#allocation5 + $0x844] ss:$24 sps:$4 sm:$0xff]  }
  0xb6   :  { %1967 = vmatpush1.bf16.msra.mxu0 %v4824_v59  ;;  %1927 = vmatprep.subr.bf16.mxu1 %v4825_v60  ;;  %v4918_v59 = vld [vmem:[#allocation5 + $0x24c] ss:$24 sps:$4 sm:$0xff]   ;;  %v4913_v60 = vld [vmem:[#allocation5 + $0x840] ss:$24 sps:$4 sm:$0xff]  }
  0xb7   :  { %1968 = vmatprep.subr.bf16.mxu0 %v4827_v61  ;;  %v4916_v61 = vld [vmem:[#allocation5 + $0x248] ss:$24 sps:$4 sm:$0xff]  }
  0xb9   :  { %1928 = vmatpush1.bf16.msra.mxu1 %v4829_v62  ;;  %v4921_v62 = vld [vmem:[#allocation5 + $0x874] ss:$24 sps:$4 sm:$0xff]  }
  0xba   :  { %1969 = vmatpush1.bf16.msra.mxu0 %v4830_v63  ;;  %1929 = vmatprep.subr.bf16.mxu1 %v4831_v0  ;;  %v4924_v63 = vld [vmem:[#allocation5 + $0x27c] ss:$24 sps:$4 sm:$0xff]   ;;  %v4919_v0 = vld [vmem:[#allocation5 + $0x870] ss:$24 sps:$4 sm:$0xff]  }
  0xbb   :  { %1970 = vmatprep.subr.bf16.mxu0 %v4833_v1  ;;  %v4922_v1 = vld [vmem:[#allocation5 + $0x278] ss:$24 sps:$4 sm:$0xff]  }
  0xbd   :  { %1930 = vmatpush1.bf16.msra.mxu1 %v4835_v2  ;;  %v4927_v2 = vld [vmem:[#allocation5 + $0x8a4] ss:$24 sps:$4 sm:$0xff]  }
  0xbe   :  { %1971 = vmatpush1.bf16.msra.mxu0 %v4836_v3  ;;  %2022 = vmatprep.subr.bf16.mxu1 %v4845_v5  ;;  %v4930_v3 = vld [vmem:[#allocation5 + $0x2ac] ss:$24 sps:$4 sm:$0xff]   ;;  %v4928_v5 = vld [vmem:[#allocation5 + $0x2a8] ss:$24 sps:$4 sm:$0xff]  }
  0xbf   :  { %1981 = vmatprep.subr.bf16.mxu0 %v4842_v4  ;;  %v4925_v4 = vld [vmem:[#allocation5 + $0x8a0] ss:$24 sps:$4 sm:$0xff]  }
  0xc0   :  { %1932 = vmatmul.mubr.bf16.vlgmr.msra.gmra.mrb[0].mxu1 %v5851_v6 }
  0xc1   :  { %1973 = vmatmul.mubr.bf16.vlgmr.msra.gmra.mrb[0].mxu0 %v5853_v7  ;;  %2023 = vmatpush1.bf16.msra.mxu1 %v4843_v9  ;;  %v4936_v9 = vld [vmem:[#allocation5 + $0x2dc] ss:$24 sps:$4 sm:$0xff]  }
  0xc2   :  { %1982 = vmatpush1.bf16.msra.mxu0 %v4840_v8  ;;  %2024 = vmatprep.subr.bf16.mxu1 %v4852_v11  ;;  %v4933_v8 = vld [vmem:[#allocation5 + $0x8d4] ss:$24 sps:$4 sm:$0xff]   ;;  %v4934_v11 = vld [vmem:[#allocation5 + $0x2d8] ss:$24 sps:$4 sm:$0xff]  }
  0xc3   :  { %1983 = vmatprep.subr.bf16.mxu0 %v4849_v10  ;;  %2054 = vmatprep.mubr.bf16.mxu1 %v5845_v47  ;;  %v4931_v10 = vld [vmem:[#allocation5 + $0x8d0] ss:$24 sps:$4 sm:$0xff]  }
  0xc4   :  { %2013 = vmatprep.mubr.bf16.mxu0 %v5862_v34 }
  0xc5   :  { %2025 = vmatpush1.bf16.msra.mxu1 %v4850_v13  ;;  %v4944_v13 = vld [vmem:[#allocation5 + $0x14] ss:$24 sps:$4 sm:$0xff]  }
  0xc6   :  { %1984 = vmatpush1.bf16.msra.mxu0 %v4847_v12  ;;  %2026 = vmatprep.subr.bf16.mxu1 %v4858_v15  ;;  %v4941_v12 = vld [vmem:[#allocation5 + $0x30c] ss:$24 sps:$4 sm:$0xff]   ;;  %v4939_v15 = vld [vmem:[#allocation5 + $0x308] ss:$24 sps:$4 sm:$0xff]  }
  0xc7   :  { %1985 = vmatprep.subr.bf16.mxu0 %v4855_v14  ;;  %v5867_v14 = vcombine.low %v5858_v32, %v5858_v32  ;;  %v4971_v32 = vld [vmem:[#allocation5 + $0x3fc] ss:$24 sps:$4 sm:$0xff]  }
  0xc9   :  { %2027 = vmatpush1.bf16.msra.mxu1 %v4856_v17  ;;  %v4947_v17 = vld [vmem:[#allocation5 + $0x33c] ss:$24 sps:$4 sm:$0xff]  }
  0xca   :  { %1986 = vmatpush1.bf16.msra.mxu0 %v4853_v16  ;;  %2028 = vmatprep.subr.bf16.mxu1 %v4864_v19  ;;  %v4942_v16 = vld [vmem:[#allocation5 + $0x10] ss:$24 sps:$4 sm:$0xff]  }
  0xcb   :  { %1987 = vmatprep.subr.bf16.mxu0 %v4861_v18  ;;  %v4950_v18 = vld [vmem:[#allocation5 + $0x44] ss:$24 sps:$4 sm:$0xff]   ;;  %v4945_v19 = vld [vmem:[#allocation5 + $0x338] ss:$24 sps:$4 sm:$0xff]  }
  0xcd   :  { %2029 = vmatpush1.bf16.msra.mxu1 %v4862_v21  ;;  %v4953_v21 = vld [vmem:[#allocation5 + $0x36c] ss:$24 sps:$4 sm:$0xff]  }
  0xce   :  { %1988 = vmatpush1.bf16.msra.mxu0 %v4859_v20  ;;  %2030 = vmatprep.subr.bf16.mxu1 %v4870_v23  ;;  %v4948_v20 = vld [vmem:[#allocation5 + $0x40] ss:$24 sps:$4 sm:$0xff]  }
  0xcf   :  { %1989 = vmatprep.subr.bf16.mxu0 %v4867_v22  ;;  %v4956_v22 = vld [vmem:[#allocation5 + $0x74] ss:$24 sps:$4 sm:$0xff]   ;;  %v4951_v23 = vld [vmem:[#allocation5 + $0x368] ss:$24 sps:$4 sm:$0xff]  }
  0xd1   :  { %2031 = vmatpush1.bf16.msra.mxu1 %v4868_v25  ;;  %v4959_v25 = vld [vmem:[#allocation5 + $0x39c] ss:$24 sps:$4 sm:$0xff]  }
  0xd2   :  { %1990 = vmatpush1.bf16.msra.mxu0 %v4865_v24  ;;  %2032 = vmatprep.subr.bf16.mxu1 %v4876_v27  ;;  %v4954_v24 = vld [vmem:[#allocation5 + $0x70] ss:$24 sps:$4 sm:$0xff]  }
  0xd3   :  { %1991 = vmatprep.subr.bf16.mxu0 %v4873_v26  ;;  %v4962_v26 = vld [vmem:[#allocation5 + $0xa4] ss:$24 sps:$4 sm:$0xff]   ;;  %v4957_v27 = vld [vmem:[#allocation5 + $0x398] ss:$24 sps:$4 sm:$0xff]  }
  0xd5   :  { %2033 = vmatpush1.bf16.msra.mxu1 %v4874_v29  ;;  %v4965_v29 = vld [vmem:[#allocation5 + $0x3cc] ss:$24 sps:$4 sm:$0xff]  }
  0xd6   :  { %1992 = vmatpush1.bf16.msra.mxu0 %v4871_v28  ;;  %2034 = vmatprep.subr.bf16.mxu1 %v4882_v31  ;;  %v4960_v28 = vld [vmem:[#allocation5 + $0xa0] ss:$24 sps:$4 sm:$0xff]  }
  0xd7   :  { %1993 = vmatprep.subr.bf16.mxu0 %v4879_v30  ;;  %v4968_v30 = vld [vmem:[#allocation5 + $0xd4] ss:$24 sps:$4 sm:$0xff]   ;;  %v4963_v31 = vld [vmem:[#allocation5 + $0x3c8] ss:$24 sps:$4 sm:$0xff]  }
  0xd9   :  { %2035 = vmatpush1.bf16.msra.mxu1 %v4880_v35  ;;  %v4969_v35 = vld [vmem:[#allocation5 + $0x3f8] ss:$24 sps:$4 sm:$0xff]  }
  0xda   :  { %1994 = vmatpush1.bf16.msra.mxu0 %v4877_v33  ;;  %2036 = vmatprep.subr.bf16.mxu1 %v4888_v37  ;;  %v4974_v33 = vld [vmem:[#allocation5 + $0x104] ss:$24 sps:$4 sm:$0xff]  }
  0xdb   :  { %1995 = vmatprep.subr.bf16.mxu0 %v4885_v36  ;;  %v4972_v36 = vld [vmem:[#allocation5 + $0x100] ss:$24 sps:$4 sm:$0xff]   ;;  %v4977_v37 = vld [vmem:[#allocation5 + $0x42c] ss:$24 sps:$4 sm:$0xff]  }
  0xdd   :  { %2037 = vmatpush1.bf16.msra.mxu1 %v4886_v39  ;;  %v4975_v39 = vld [vmem:[#allocation5 + $0x428] ss:$24 sps:$4 sm:$0xff]  }
  0xde   :  { %1996 = vmatpush1.bf16.msra.mxu0 %v4883_v38  ;;  %2038 = vmatprep.subr.bf16.mxu1 %v4894_v41  ;;  %v4980_v38 = vld [vmem:[#allocation5 + $0x134] ss:$24 sps:$4 sm:$0xff]  }
  0xdf   :  { %1997 = vmatprep.subr.bf16.mxu0 %v4891_v40  ;;  %v4978_v40 = vld [vmem:[#allocation5 + $0x130] ss:$24 sps:$4 sm:$0xff]   ;;  %v4983_v41 = vld [vmem:[#allocation5 + $0x45c] ss:$24 sps:$4 sm:$0xff]  }
  0xe1   :  { %2039 = vmatpush1.bf16.msra.mxu1 %v4892_v43  ;;  %v4981_v43 = vld [vmem:[#allocation5 + $0x458] ss:$24 sps:$4 sm:$0xff]  }
  0xe2   :  { %1998 = vmatpush1.bf16.msra.mxu0 %v4889_v42  ;;  %2040 = vmatprep.subr.bf16.mxu1 %v4900_v45  ;;  %v4986_v42 = vld [vmem:[#allocation5 + $0x164] ss:$24 sps:$4 sm:$0xff]  }
  0xe3   :  { %1999 = vmatprep.subr.bf16.mxu0 %v4897_v44  ;;  %v4984_v44 = vld [vmem:[#allocation5 + $0x160] ss:$24 sps:$4 sm:$0xff]   ;;  %v4989_v45 = vld [vmem:[#allocation5 + $0x48c] ss:$24 sps:$4 sm:$0xff]  }
  0xe5   :  { %2041 = vmatpush1.bf16.msra.mxu1 %v4898_v48  ;;  %v4987_v48 = vld [vmem:[#allocation5 + $0x488] ss:$24 sps:$4 sm:$0xff]  }
  0xe6   :  { %2000 = vmatpush1.bf16.msra.mxu0 %v4895_v46  ;;  %2042 = vmatprep.subr.bf16.mxu1 %v4906_v50  ;;  %v4992_v46 = vld [vmem:[#allocation5 + $0x194] ss:$24 sps:$4 sm:$0xff]  }
  0xe7   :  { %2001 = vmatprep.subr.bf16.mxu0 %v4903_v49  ;;  %v4990_v49 = vld [vmem:[#allocation5 + $0x190] ss:$24 sps:$4 sm:$0xff]   ;;  %v4995_v50 = vld [vmem:[#allocation5 + $0x4bc] ss:$24 sps:$4 sm:$0xff]  }
  0xe9   :  { %2043 = vmatpush1.bf16.msra.mxu1 %v4904_v53  ;;  %v4993_v53 = vld [vmem:[#allocation5 + $0x4b8] ss:$24 sps:$4 sm:$0xff]  }
  0xea   :  { %2002 = vmatpush1.bf16.msra.mxu0 %v4901_v52  ;;  %2044 = vmatprep.subr.bf16.mxu1 %v4912_v55  ;;  %v4998_v52 = vld [vmem:[#allocation5 + $0x1c4] ss:$24 sps:$4 sm:$0xff]  }
  0xeb   :  { %2003 = vmatprep.subr.bf16.mxu0 %v4909_v54  ;;  %v4996_v54 = vld [vmem:[#allocation5 + $0x1c0] ss:$24 sps:$4 sm:$0xff]   ;;  %v5001_v55 = vld [vmem:[#allocation5 + $0x4ec] ss:$24 sps:$4 sm:$0xff]  }
  0xed   :  { %2045 = vmatpush1.bf16.msra.mxu1 %v4910_v57  ;;  %v4999_v57 = vld [vmem:[#allocation5 + $0x4e8] ss:$24 sps:$4 sm:$0xff]  }
  0xee   :  { %2004 = vmatpush1.bf16.msra.mxu0 %v4907_v56  ;;  %2046 = vmatprep.subr.bf16.mxu1 %v4918_v59  ;;  %v5004_v56 = vld [vmem:[#allocation5 + $0x1f4] ss:$24 sps:$4 sm:$0xff]  }
  0xef   :  { %2005 = vmatprep.subr.bf16.mxu0 %v4915_v58  ;;  %v5002_v58 = vld [vmem:[#allocation5 + $0x1f0] ss:$24 sps:$4 sm:$0xff]   ;;  %v5007_v59 = vld [vmem:[#allocation5 + $0x51c] ss:$24 sps:$4 sm:$0xff]  }
  0xf1   :  { %2047 = vmatpush1.bf16.msra.mxu1 %v4916_v61  ;;  %v5005_v61 = vld [vmem:[#allocation5 + $0x518] ss:$24 sps:$4 sm:$0xff]  }
  0xf2   :  { %2006 = vmatpush1.bf16.msra.mxu0 %v4913_v60  ;;  %2048 = vmatprep.subr.bf16.mxu1 %v4924_v63  ;;  %v5010_v60 = vld [vmem:[#allocation5 + $0x224] ss:$24 sps:$4 sm:$0xff]  }
  0xf3   :  { %2007 = vmatprep.subr.bf16.mxu0 %v4921_v62  ;;  %v5008_v62 = vld [vmem:[#allocation5 + $0x220] ss:$24 sps:$4 sm:$0xff]   ;;  %v5013_v63 = vld [vmem:[#allocation5 + $0x54c] ss:$24 sps:$4 sm:$0xff]  }
  0xf5   :  { %2049 = vmatpush1.bf16.msra.mxu1 %v4922_v1  ;;  %v5011_v1 = vld [vmem:[#allocation5 + $0x548] ss:$24 sps:$4 sm:$0xff]  }
  0xf6   :  { %2008 = vmatpush1.bf16.msra.mxu0 %v4919_v0  ;;  %2050 = vmatprep.subr.bf16.mxu1 %v4930_v3  ;;  %v5016_v0 = vld [vmem:[#allocation5 + $0x254] ss:$24 sps:$4 sm:$0xff]  }
  0xf7   :  { %2009 = vmatprep.subr.bf16.mxu0 %v4927_v2  ;;  %v5014_v2 = vld [vmem:[#allocation5 + $0x250] ss:$24 sps:$4 sm:$0xff]   ;;  %v5019_v3 = vld [vmem:[#allocation5 + $0x57c] ss:$24 sps:$4 sm:$0xff]  }
  0xf9   :  { %2051 = vmatpush1.bf16.msra.mxu1 %v4928_v5  ;;  %v5017_v5 = vld [vmem:[#allocation5 + $0x578] ss:$24 sps:$4 sm:$0xff]  }
  0xfa   :  { %2010 = vmatpush1.bf16.msra.mxu0 %v4925_v4  ;;  %2052 = vmatprep.subr.bf16.mxu1 %v4936_v9  ;;  %v5022_v4 = vld [vmem:[#allocation5 + $0x284] ss:$24 sps:$4 sm:$0xff]  }
  0xfb   :  { %2011 = vmatprep.subr.bf16.mxu0 %v4933_v8  ;;  %v5020_v8 = vld [vmem:[#allocation5 + $0x280] ss:$24 sps:$4 sm:$0xff]   ;;  %v5025_v9 = vld [vmem:[#allocation5 + $0x5ac] ss:$24 sps:$4 sm:$0xff]  }
  0xfd   :  { %2053 = vmatpush1.bf16.msra.mxu1 %v4934_v11  ;;  %v5023_v11 = vld [vmem:[#allocation5 + $0x5a8] ss:$24 sps:$4 sm:$0xff]  }
  0xfe   :  { %2012 = vmatpush1.bf16.msra.mxu0 %v4931_v10  ;;  %2063 = vmatprep.subr.bf16.mxu1 %v4941_v12  ;;  %v5028_v10 = vld [vmem:[#allocation5 + $0x2b4] ss:$24 sps:$4 sm:$0xff]   ;;  %v5026_v12 = vld [vmem:[#allocation5 + $0x2b0] ss:$24 sps:$4 sm:$0xff]  }
  0xff   :  { %2145 = vmatprep.subr.bf16.mxu0 %v4944_v13  ;;  %v5031_v13 = vld [vmem:[#allocation5 + $0x5dc] ss:$24 sps:$4 sm:$0xff]  }
 0x100   :  { %2055 = vmatmul.mubr.bf16.vlgmr.msra.gmra.mrb[4].mxu1 %v5851_v6 }
 0x101   :  { %2014 = vmatmul.mubr.bf16.vlgmr.msra.gmra.mrb[0].mxu0 %v5867_v14  ;;  %2064 = vmatpush1.bf16.msra.mxu1 %v4939_v15  ;;  %v5034_v15 = vld [vmem:[#allocation5 + $0x2e4] ss:$24 sps:$4 sm:$0xff]  }
 0x102   :  { %2146 = vmatpush1.bf16.msra.mxu0 %v4942_v16  ;;  %2065 = vmatprep.subr.bf16.mxu1 %v4947_v17  ;;  %v5029_v16 = vld [vmem:[#allocation5 + $0x5d8] ss:$24 sps:$4 sm:$0xff]  }
 0x103   :  { %2147 = vmatprep.subr.bf16.mxu0 %v4950_v18  ;;  %2095 = vmatprep.mubr.bf16.mxu1 %v5847_v51  ;;  %v5032_v17 = vld [vmem:[#allocation5 + $0x2e0] ss:$24 sps:$4 sm:$0xff]   ;;  %v5037_v18 = vld [vmem:[#allocation5 + $0x60c] ss:$24 sps:$4 sm:$0xff]  }
 0x104   :  { %2177 = vmatprep.mubr.bf16.mxu0 %v5845_v47  ;;  %v4966_v47 = vld [vmem:[#allocation5 + $0xd0] ss:$24 sps:$4 sm:$0xff]  }
 0x105   :  { %2066 = vmatpush1.bf16.msra.mxu1 %v4945_v19  ;;  %v5040_v19 = vld [vmem:[#allocation5 + $0x314] ss:$24 sps:$4 sm:$0xff]  }
 0x106   :  { %2148 = vmatpush1.bf16.msra.mxu0 %v4948_v20  ;;  %2067 = vmatprep.subr.bf16.mxu1 %v4953_v21  ;;  %v5035_v20 = vld [vmem:[#allocation5 + $0x608] ss:$24 sps:$4 sm:$0xff]  }
 0x107   :  { %2149 = vmatprep.subr.bf16.mxu0 %v4956_v22  ;;  %v5038_v21 = vld [vmem:[#allocation5 + $0x310] ss:$24 sps:$4 sm:$0xff]   ;;  %v5043_v22 = vld [vmem:[#allocation5 + $0x63c] ss:$24 sps:$4 sm:$0xff]  }
 0x109   :  { %2068 = vmatpush1.bf16.msra.mxu1 %v4951_v23  ;;  %v5046_v23 = vld [vmem:[#allocation5 + $0x344] ss:$24 sps:$4 sm:$0xff]  }
 0x10a   :  { %2150 = vmatpush1.bf16.msra.mxu0 %v4954_v24  ;;  %2069 = vmatprep.subr.bf16.mxu1 %v4959_v25  ;;  %v5041_v24 = vld [vmem:[#allocation5 + $0x638] ss:$24 sps:$4 sm:$0xff]  }
 0x10b   :  { %2151 = vmatprep.subr.bf16.mxu0 %v4962_v26  ;;  %v5044_v25 = vld [vmem:[#allocation5 + $0x340] ss:$24 sps:$4 sm:$0xff]   ;;  %v5049_v26 = vld [vmem:[#allocation5 + $0x66c] ss:$24 sps:$4 sm:$0xff]  }
 0x10d   :  { %2070 = vmatpush1.bf16.msra.mxu1 %v4957_v27  ;;  %v5052_v27 = vld [vmem:[#allocation5 + $0x374] ss:$24 sps:$4 sm:$0xff]  }
 0x10e   :  { %2152 = vmatpush1.bf16.msra.mxu0 %v4960_v28  ;;  %2071 = vmatprep.subr.bf16.mxu1 %v4965_v29  ;;  %v5047_v28 = vld [vmem:[#allocation5 + $0x668] ss:$24 sps:$4 sm:$0xff]  }
 0x10f   :  { %2153 = vmatprep.subr.bf16.mxu0 %v4968_v30  ;;  %v5050_v29 = vld [vmem:[#allocation5 + $0x370] ss:$24 sps:$4 sm:$0xff]   ;;  %v5055_v30 = vld [vmem:[#allocation5 + $0x69c] ss:$24 sps:$4 sm:$0xff]  }
 0x111   :  { %2072 = vmatpush1.bf16.msra.mxu1 %v4963_v31  ;;  %v5053_v31 = vld [vmem:[#allocation5 + $0x698] ss:$24 sps:$4 sm:$0xff]  }
 0x112   :  { %2154 = vmatpush1.bf16.msra.mxu0 %v4966_v47  ;;  %2073 = vmatprep.subr.bf16.mxu1 %v4971_v32  ;;  %v5056_v47 = vld [vmem:[#allocation5 + $0x3a0] ss:$24 sps:$4 sm:$0xff]   ;;  %v5061_v32 = vld [vmem:[#allocation5 + $0x6cc] ss:$24 sps:$4 sm:$0xff]  }
 0x113   :  { %2155 = vmatprep.subr.bf16.mxu0 %v4974_v33  ;;  %v5064_v33 = vld [vmem:[#allocation5 + $0x3d4] ss:$24 sps:$4 sm:$0xff]  }
 0x115   :  { %2074 = vmatpush1.bf16.msra.mxu1 %v4969_v35  ;;  %v5059_v35 = vld [vmem:[#allocation5 + $0x6c8] ss:$24 sps:$4 sm:$0xff]  }
 0x116   :  { %2156 = vmatpush1.bf16.msra.mxu0 %v4972_v36  ;;  %2075 = vmatprep.subr.bf16.mxu1 %v4977_v37  ;;  %v5062_v36 = vld [vmem:[#allocation5 + $0x3d0] ss:$24 sps:$4 sm:$0xff]   ;;  %v5070_v37 = vld [vmem:[#allocation5 + $0x404] ss:$24 sps:$4 sm:$0xff]  }
 0x117   :  { %2157 = vmatprep.subr.bf16.mxu0 %v4980_v38  ;;  %v5065_v38 = vld [vmem:[#allocation5 + $0x6f8] ss:$24 sps:$4 sm:$0xff]  }
 0x119   :  { %2076 = vmatpush1.bf16.msra.mxu1 %v4975_v39  ;;  %v5068_v39 = vld [vmem:[#allocation5 + $0x400] ss:$24 sps:$4 sm:$0xff]  }
 0x11a   :  { %2158 = vmatpush1.bf16.msra.mxu0 %v4978_v40  ;;  %2077 = vmatprep.subr.bf16.mxu1 %v4983_v41  ;;  %v5073_v40 = vld [vmem:[#allocation5 + $0x72c] ss:$24 sps:$4 sm:$0xff]  }
 0x11b   :  { %2159 = vmatprep.subr.bf16.mxu0 %v4986_v42  ;;  %v5076_v41 = vld [vmem:[#allocation5 + $0x434] ss:$24 sps:$4 sm:$0xff]   ;;  %v5071_v42 = vld [vmem:[#allocation5 + $0x728] ss:$24 sps:$4 sm:$0xff]  }
 0x11d   :  { %2078 = vmatpush1.bf16.msra.mxu1 %v4981_v43  ;;  %v5074_v43 = vld [vmem:[#allocation5 + $0x430] ss:$24 sps:$4 sm:$0xff]  }
 0x11e   :  { %2160 = vmatpush1.bf16.msra.mxu0 %v4984_v44  ;;  %2079 = vmatprep.subr.bf16.mxu1 %v4989_v45  ;;  %v5079_v44 = vld [vmem:[#allocation5 + $0x75c] ss:$24 sps:$4 sm:$0xff]  }
 0x11f   :  { %2161 = vmatprep.subr.bf16.mxu0 %v4992_v46  ;;  %v5082_v45 = vld [vmem:[#allocation5 + $0x464] ss:$24 sps:$4 sm:$0xff]   ;;  %v5077_v46 = vld [vmem:[#allocation5 + $0x758] ss:$24 sps:$4 sm:$0xff]  }
 0x121   :  { %2080 = vmatpush1.bf16.msra.mxu1 %v4987_v48  ;;  %v5080_v48 = vld [vmem:[#allocation5 + $0x460] ss:$24 sps:$4 sm:$0xff]  }
 0x122   :  { %2162 = vmatpush1.bf16.msra.mxu0 %v4990_v49  ;;  %2081 = vmatprep.subr.bf16.mxu1 %v4995_v50  ;;  %v5085_v49 = vld [vmem:[#allocation5 + $0x78c] ss:$24 sps:$4 sm:$0xff]  }
 0x123   :  { %2163 = vmatprep.subr.bf16.mxu0 %v4998_v52  ;;  %v5088_v50 = vld [vmem:[#allocation5 + $0x494] ss:$24 sps:$4 sm:$0xff]   ;;  %v5083_v52 = vld [vmem:[#allocation5 + $0x788] ss:$24 sps:$4 sm:$0xff]  }
 0x125   :  { %2082 = vmatpush1.bf16.msra.mxu1 %v4993_v53  ;;  %v5086_v53 = vld [vmem:[#allocation5 + $0x490] ss:$24 sps:$4 sm:$0xff]  }
 0x126   :  { %2164 = vmatpush1.bf16.msra.mxu0 %v4996_v54  ;;  %2083 = vmatprep.subr.bf16.mxu1 %v5001_v55  ;;  %v5091_v54 = vld [vmem:[#allocation5 + $0x7bc] ss:$24 sps:$4 sm:$0xff]  }
 0x127   :  { %2165 = vmatprep.subr.bf16.mxu0 %v5004_v56  ;;  %v5094_v55 = vld [vmem:[#allocation5 + $0x4c4] ss:$24 sps:$4 sm:$0xff]   ;;  %v5089_v56 = vld [vmem:[#allocation5 + $0x7b8] ss:$24 sps:$4 sm:$0xff]  }
 0x129   :  { %2084 = vmatpush1.bf16.msra.mxu1 %v4999_v57  ;;  %v5092_v57 = vld [vmem:[#allocation5 + $0x4c0] ss:$24 sps:$4 sm:$0xff]  }
 0x12a   :  { %2166 = vmatpush1.bf16.msra.mxu0 %v5002_v58  ;;  %2085 = vmatprep.subr.bf16.mxu1 %v5007_v59  ;;  %v5097_v58 = vld [vmem:[#allocation5 + $0x7ec] ss:$24 sps:$4 sm:$0xff]  }
 0x12b   :  { %2167 = vmatprep.subr.bf16.mxu0 %v5010_v60  ;;  %v5100_v59 = vld [vmem:[#allocation5 + $0x4f4] ss:$24 sps:$4 sm:$0xff]   ;;  %v5095_v60 = vld [vmem:[#allocation5 + $0x7e8] ss:$24 sps:$4 sm:$0xff]  }
 0x12d   :  { %2086 = vmatpush1.bf16.msra.mxu1 %v5005_v61  ;;  %v5098_v61 = vld [vmem:[#allocation5 + $0x4f0] ss:$24 sps:$4 sm:$0xff]  }
 0x12e   :  { %2168 = vmatpush1.bf16.msra.mxu0 %v5008_v62  ;;  %2087 = vmatprep.subr.bf16.mxu1 %v5013_v63  ;;  %v5103_v62 = vld [vmem:[#allocation5 + $0x81c] ss:$24 sps:$4 sm:$0xff]  }
 0x12f   :  { %2169 = vmatprep.subr.bf16.mxu0 %v5016_v0  ;;  %v5106_v63 = vld [vmem:[#allocation5 + $0x524] ss:$24 sps:$4 sm:$0xff]   ;;  %v5101_v0 = vld [vmem:[#allocation5 + $0x818] ss:$24 sps:$4 sm:$0xff]  }
 0x131   :  { %2088 = vmatpush1.bf16.msra.mxu1 %v5011_v1  ;;  %v5104_v1 = vld [vmem:[#allocation5 + $0x520] ss:$24 sps:$4 sm:$0xff]  }
 0x132   :  { %2170 = vmatpush1.bf16.msra.mxu0 %v5014_v2  ;;  %2089 = vmatprep.subr.bf16.mxu1 %v5019_v3  ;;  %v5109_v2 = vld [vmem:[#allocation5 + $0x84c] ss:$24 sps:$4 sm:$0xff]  }
 0x133   :  { %2171 = vmatprep.subr.bf16.mxu0 %v5022_v4  ;;  %v5112_v3 = vld [vmem:[#allocation5 + $0x554] ss:$24 sps:$4 sm:$0xff]   ;;  %v5107_v4 = vld [vmem:[#allocation5 + $0x848] ss:$24 sps:$4 sm:$0xff]  }
 0x135   :  { %2090 = vmatpush1.bf16.msra.mxu1 %v5017_v5  ;;  %v5110_v5 = vld [vmem:[#allocation5 + $0x550] ss:$24 sps:$4 sm:$0xff]  }
 0x136   :  { %2172 = vmatpush1.bf16.msra.mxu0 %v5020_v8  ;;  %2091 = vmatprep.subr.bf16.mxu1 %v5025_v9  ;;  %v5115_v8 = vld [vmem:[#allocation5 + $0x87c] ss:$24 sps:$4 sm:$0xff]  }
 0x137   :  { %2173 = vmatprep.subr.bf16.mxu0 %v5028_v10  ;;  %v5118_v9 = vld [vmem:[#allocation5 + $0x584] ss:$24 sps:$4 sm:$0xff]   ;;  %v5113_v10 = vld [vmem:[#allocation5 + $0x878] ss:$24 sps:$4 sm:$0xff]  }
 0x139   :  { %2092 = vmatpush1.bf16.msra.mxu1 %v5023_v11  ;;  %v5116_v11 = vld [vmem:[#allocation5 + $0x580] ss:$24 sps:$4 sm:$0xff]  }
 0x13a   :  { %2174 = vmatpush1.bf16.msra.mxu0 %v5026_v12  ;;  %2093 = vmatprep.subr.bf16.mxu1 %v5031_v13  ;;  %v5121_v12 = vld [vmem:[#allocation5 + $0x8ac] ss:$24 sps:$4 sm:$0xff]  }
 0x13b   :  { %2175 = vmatprep.subr.bf16.mxu0 %v5034_v15  ;;  %v5124_v13 = vld [vmem:[#allocation5 + $0x5b4] ss:$24 sps:$4 sm:$0xff]   ;;  %v5119_v15 = vld [vmem:[#allocation5 + $0x8a8] ss:$24 sps:$4 sm:$0xff]  }
 0x13d   :  { %2094 = vmatpush1.bf16.msra.mxu1 %v5029_v16  ;;  %v5122_v16 = vld [vmem:[#allocation5 + $0x5b0] ss:$24 sps:$4 sm:$0xff]  }
 0x13e   :  { %2176 = vmatpush1.bf16.msra.mxu0 %v5032_v17  ;;  %2104 = vmatprep.subr.bf16.mxu1 %v5037_v18  ;;  %v5127_v17 = vld [vmem:[#allocation5 + $0x8dc] ss:$24 sps:$4 sm:$0xff]  }
 0x13f   :  { %2186 = vmatprep.subr.bf16.mxu0 %v5040_v19  ;;  %v5130_v18 = vld [vmem:[#allocation5 + $0x5e4] ss:$24 sps:$4 sm:$0xff]   ;;  %v5125_v19 = vld [vmem:[#allocation5 + $0x8d8] ss:$24 sps:$4 sm:$0xff]  }
 0x140   :  { %2096 = vmatmul.mubr.bf16.vlgmr.msra.gmra.mrb[4].mxu1 %v5853_v7 }
 0x141   :  { %2178 = vmatmul.mubr.bf16.vlgmr.msra.gmra.mrb[4].mxu0 %v5851_v6  ;;  %2105 = vmatpush1.bf16.msra.mxu1 %v5035_v20  ;;  %v5058_v6 = vld [vmem:[#allocation5 + $0x3a4] ss:$24 sps:$4 sm:$0xff]   ;;  %v5128_v20 = vld [vmem:[#allocation5 + $0x5e0] ss:$24 sps:$4 sm:$0xff]  }
 0x142   :  { %2187 = vmatpush1.bf16.msra.mxu0 %v5038_v21  ;;  %2106 = vmatprep.subr.bf16.mxu1 %v5043_v22  ;;  %v5133_v21 = vld [vmem:[#allocation5 + $0x614] ss:$24 sps:$4 sm:$0xff]  }
 0x143   :  { %2188 = vmatprep.subr.bf16.mxu0 %v5046_v23  ;;  %2136 = vmatprep.mubr.bf16.mxu1 %v5862_v34  ;;  %v5163_v22 = vld [vmem:[#allocation8 + $0x4] ss:$16 sps:$4 sm:$0xff]  }
 0x144   :  { %2218 = vmatprep.mubr.bf16.mxu0 %v5847_v51  ;;  %v5067_v51 = vld [vmem:[#allocation5 + $0x6fc] ss:$24 sps:$4 sm:$0xff]   ;;  %v5131_v23 = vld [vmem:[#allocation5 + $0x610] ss:$24 sps:$4 sm:$0xff]  }
 0x145   :  { %2107 = vmatpush1.bf16.msra.mxu1 %v5041_v24  ;;  %v5161_v24 = vld [vmem:[#allocation8] ss:$16 sps:$4 sm:$0xff]  }
 0x146   :  { %2189 = vmatpush1.bf16.msra.mxu0 %v5044_v25  ;;  %2108 = vmatprep.subr.bf16.mxu1 %v5049_v26  ;;  %v5136_v25 = vld [vmem:[#allocation5 + $0x644] ss:$24 sps:$4 sm:$0xff]  }
 0x147   :  { %2190 = vmatprep.subr.bf16.mxu0 %v5052_v27  ;;  %v5169_v26 = vld [vmem:[#allocation8 + $0x24] ss:$16 sps:$4 sm:$0xff]  }
 0x148   :  { %v5134_v27 = vld [vmem:[#allocation5 + $0x640] ss:$24 sps:$4 sm:$0xff]  }
 0x149   :  { %2109 = vmatpush1.bf16.msra.mxu1 %v5047_v28  ;;  %v5167_v28 = vld [vmem:[#allocation8 + $0x20] ss:$16 sps:$4 sm:$0xff]  }
 0x14a   :  { %2191 = vmatpush1.bf16.msra.mxu0 %v5050_v29  ;;  %2110 = vmatprep.subr.bf16.mxu1 %v5055_v30  ;;  %v5139_v29 = vld [vmem:[#allocation5 + $0x674] ss:$24 sps:$4 sm:$0xff]  }
 0x14b   :  { %2192 = vmatprep.subr.bf16.mxu0 %v5058_v6  ;;  %v5175_v30 = vld [vmem:[#allocation8 + $0x44] ss:$16 sps:$4 sm:$0xff]  }
 0x14c   :  { %v5137_v6 = vld [vmem:[#allocation5 + $0x670] ss:$24 sps:$4 sm:$0xff]  }
 0x14d   :  { %2111 = vmatpush1.bf16.msra.mxu1 %v5053_v31  ;;  %v5142_v31 = vld [vmem:[#allocation5 + $0x6a4] ss:$24 sps:$4 sm:$0xff]  }
 0x14e   :  { %2193 = vmatpush1.bf16.msra.mxu0 %v5056_v47  ;;  %2112 = vmatprep.subr.bf16.mxu1 %v5061_v32  ;;  %v5173_v47 = vld [vmem:[#allocation8 + $0x40] ss:$16 sps:$4 sm:$0xff]   ;;  %v5181_v32 = vld [vmem:[#allocation8 + $0x64] ss:$16 sps:$4 sm:$0xff]  }
 0x14f   :  { %2194 = vmatprep.subr.bf16.mxu0 %v5064_v33  ;;  %v5145_v33 = vld [vmem:[#allocation5 + $0x6d4] ss:$24 sps:$4 sm:$0xff]  }
 0x151   :  { %2113 = vmatpush1.bf16.msra.mxu1 %v5059_v35  ;;  %v5179_v35 = vld [vmem:[#allocation8 + $0x60] ss:$16 sps:$4 sm:$0xff]  }
 0x152   :  { %2195 = vmatpush1.bf16.msra.mxu0 %v5062_v36  ;;  %2114 = vmatprep.subr.bf16.mxu1 %v5067_v51  ;;  %v5187_v36 = vld [vmem:[#allocation8 + $0x84] ss:$16 sps:$4 sm:$0xff]  }
 0x153   :  { %2196 = vmatprep.subr.bf16.mxu0 %v5070_v37  ;;  %v5143_v51 = vld [vmem:[#allocation5 + $0x6d0] ss:$24 sps:$4 sm:$0xff]   ;;  %v5148_v37 = vld [vmem:[#allocation5 + $0x704] ss:$24 sps:$4 sm:$0xff]  }
 0x155   :  { %2115 = vmatpush1.bf16.msra.mxu1 %v5065_v38  ;;  %v5193_v38 = vld [vmem:[#allocation8 + $0xa4] ss:$16 sps:$4 sm:$0xff]  }
 0x156   :  { %2197 = vmatpush1.bf16.msra.mxu0 %v5068_v39  ;;  %2116 = vmatprep.subr.bf16.mxu1 %v5073_v40  ;;  %v5146_v39 = vld [vmem:[#allocation5 + $0x700] ss:$24 sps:$4 sm:$0xff]   ;;  %v5151_v40 = vld [vmem:[#allocation5 + $0x734] ss:$24 sps:$4 sm:$0xff]  }
 0x157   :  { %2198 = vmatprep.subr.bf16.mxu0 %v5076_v41  ;;  %v5191_v41 = vld [vmem:[#allocation8 + $0xa0] ss:$16 sps:$4 sm:$0xff]  }
 0x159   :  { %2117 = vmatpush1.bf16.msra.mxu1 %v5071_v42  ;;  %v5199_v42 = vld [vmem:[#allocation8 + $0xc4] ss:$16 sps:$4 sm:$0xff]  }
 0x15a   :  { %2199 = vmatpush1.bf16.msra.mxu0 %v5074_v43  ;;  %2118 = vmatprep.subr.bf16.mxu1 %v5079_v44 }
 0x15b   :  { %2200 = vmatprep.subr.bf16.mxu0 %v5082_v45 }
 0x15d   :  { %2119 = vmatpush1.bf16.msra.mxu1 %v5077_v46  ;;  %v5149_v46 = vld [vmem:[#allocation5 + $0x730] ss:$24 sps:$4 sm:$0xff]  }
 0x15e   :  { %2201 = vmatpush1.bf16.msra.mxu0 %v5080_v48  ;;  %2120 = vmatprep.subr.bf16.mxu1 %v5085_v49  ;;  %v5197_v48 = vld [vmem:[#allocation8 + $0xc0] ss:$16 sps:$4 sm:$0xff]  }
 0x15f   :  { %2202 = vmatprep.subr.bf16.mxu0 %v5088_v50  ;;  %v5154_v50 = vld [vmem:[#allocation5 + $0x764] ss:$24 sps:$4 sm:$0xff]  }
 0x161   :  { %2121 = vmatpush1.bf16.msra.mxu1 %v5083_v52  ;;  %v5205_v52 = vld [vmem:[#allocation8 + $0xe4] ss:$16 sps:$4 sm:$0xff]  }
 0x162   :  { %2203 = vmatpush1.bf16.msra.mxu0 %v5086_v53  ;;  %2122 = vmatprep.subr.bf16.mxu1 %v5091_v54  ;;  %v5152_v53 = vld [vmem:[#allocation5 + $0x760] ss:$24 sps:$4 sm:$0xff]   ;;  %v5157_v54 = vld [vmem:[#allocation5 + $0x794] ss:$24 sps:$4 sm:$0xff]  }
 0x163   :  { %2204 = vmatprep.subr.bf16.mxu0 %v5094_v55  ;;  %v5203_v55 = vld [vmem:[#allocation8 + $0xe0] ss:$16 sps:$4 sm:$0xff]  }
 0x165   :  { %2123 = vmatpush1.bf16.msra.mxu1 %v5089_v56  ;;  %v5211_v56 = vld [vmem:[#allocation8 + $0x104] ss:$16 sps:$4 sm:$0xff]  }
 0x166   :  { %2205 = vmatpush1.bf16.msra.mxu0 %v5092_v57  ;;  %2124 = vmatprep.subr.bf16.mxu1 %v5097_v58  ;;  %v5155_v57 = vld [vmem:[#allocation5 + $0x790] ss:$24 sps:$4 sm:$0xff]   ;;  %v5160_v58 = vld [vmem:[#allocation5 + $0x7c4] ss:$24 sps:$4 sm:$0xff]  }
 0x167   :  { %2206 = vmatprep.subr.bf16.mxu0 %v5100_v59  ;;  %v5209_v59 = vld [vmem:[#allocation8 + $0x100] ss:$16 sps:$4 sm:$0xff]  }
 0x169   :  { %2125 = vmatpush1.bf16.msra.mxu1 %v5095_v60  ;;  %v5217_v60 = vld [vmem:[#allocation8 + $0x124] ss:$16 sps:$4 sm:$0xff]  }
 0x16a   :  { %2207 = vmatpush1.bf16.msra.mxu0 %v5098_v61  ;;  %2126 = vmatprep.subr.bf16.mxu1 %v5103_v62  ;;  %v5158_v61 = vld [vmem:[#allocation5 + $0x7c0] ss:$24 sps:$4 sm:$0xff]   ;;  %v5166_v62 = vld [vmem:[#allocation5 + $0x7f4] ss:$24 sps:$4 sm:$0xff]  }
 0x16b   :  { %2208 = vmatprep.subr.bf16.mxu0 %v5106_v63  ;;  %v5215_v63 = vld [vmem:[#allocation8 + $0x120] ss:$16 sps:$4 sm:$0xff]  }
 0x16d   :  { %2127 = vmatpush1.bf16.msra.mxu1 %v5101_v0  ;;  %v5223_v0 = vld [vmem:[#allocation8 + $0x144] ss:$16 sps:$4 sm:$0xff]  }
 0x16e   :  { %2209 = vmatpush1.bf16.msra.mxu0 %v5104_v1  ;;  %2128 = vmatprep.subr.bf16.mxu1 %v5109_v2  ;;  %v5164_v1 = vld [vmem:[#allocation5 + $0x7f0] ss:$24 sps:$4 sm:$0xff]   ;;  %v5172_v2 = vld [vmem:[#allocation5 + $0x824] ss:$24 sps:$4 sm:$0xff]  }
 0x16f   :  { %2210 = vmatprep.subr.bf16.mxu0 %v5112_v3  ;;  %v5221_v3 = vld [vmem:[#allocation8 + $0x140] ss:$16 sps:$4 sm:$0xff]  }
 0x171   :  { %2129 = vmatpush1.bf16.msra.mxu1 %v5107_v4  ;;  %v5229_v4 = vld [vmem:[#allocation8 + $0x164] ss:$16 sps:$4 sm:$0xff]  }
 0x172   :  { %2211 = vmatpush1.bf16.msra.mxu0 %v5110_v5  ;;  %2130 = vmatprep.subr.bf16.mxu1 %v5115_v8  ;;  %v5170_v5 = vld [vmem:[#allocation5 + $0x820] ss:$24 sps:$4 sm:$0xff]   ;;  %v5178_v8 = vld [vmem:[#allocation5 + $0x854] ss:$24 sps:$4 sm:$0xff]  }
 0x173   :  { %2212 = vmatprep.subr.bf16.mxu0 %v5118_v9  ;;  %v5227_v9 = vld [vmem:[#allocation8 + $0x160] ss:$16 sps:$4 sm:$0xff]  }
 0x175   :  { %2131 = vmatpush1.bf16.msra.mxu1 %v5113_v10  ;;  %v5235_v10 = vld [vmem:[#allocation8 + $0x184] ss:$16 sps:$4 sm:$0xff]  }
 0x176   :  { %2213 = vmatpush1.bf16.msra.mxu0 %v5116_v11  ;;  %2132 = vmatprep.subr.bf16.mxu1 %v5121_v12  ;;  %v5176_v11 = vld [vmem:[#allocation5 + $0x850] ss:$24 sps:$4 sm:$0xff]  }
 0x177   :  { %2214 = vmatprep.subr.bf16.mxu0 %v5124_v13  ;;  %v5233_v12 = vld [vmem:[#allocation8 + $0x180] ss:$16 sps:$4 sm:$0xff]  }
 0x178   :  { %v5184_v13 = vld [vmem:[#allocation5 + $0x884] ss:$24 sps:$4 sm:$0xff]  }
 0x179   :  { %2133 = vmatpush1.bf16.msra.mxu1 %v5119_v15  ;;  %v5241_v15 = vld [vmem:[#allocation8 + $0x1a4] ss:$16 sps:$4 sm:$0xff]  }
 0x17a   :  { %2215 = vmatpush1.bf16.msra.mxu0 %v5122_v16  ;;  %2134 = vmatprep.subr.bf16.mxu1 %v5127_v17  ;;  %v5182_v16 = vld [vmem:[#allocation5 + $0x880] ss:$24 sps:$4 sm:$0xff]  }
 0x17b   :  { %2216 = vmatprep.subr.bf16.mxu0 %v5130_v18  ;;  %v5239_v17 = vld [vmem:[#allocation8 + $0x1a0] ss:$16 sps:$4 sm:$0xff]  }
 0x17c   :  { %v5190_v18 = vld [vmem:[#allocation5 + $0x8b4] ss:$24 sps:$4 sm:$0xff]  }
 0x17d   :  { %2135 = vmatpush1.bf16.msra.mxu1 %v5125_v19  ;;  %v5247_v19 = vld [vmem:[#allocation8 + $0x1c4] ss:$16 sps:$4 sm:$0xff]  }
 0x17e   :  { %2217 = vmatpush1.bf16.msra.mxu0 %v5128_v20  ;;  %3454 = vmatprep.subr.bf16.mxu1 %v5163_v22  ;;  %v5188_v20 = vld [vmem:[#allocation5 + $0x8b0] ss:$24 sps:$4 sm:$0xff]   ;;  %v5196_v22 = vld [vmem:[#allocation5 + $0x8e4] ss:$24 sps:$4 sm:$0xff]  }
 0x17f   :  { %2227 = vmatprep.subr.bf16.mxu0 %v5133_v21  ;;  %v5245_v21 = vld [vmem:[#allocation8 + $0x1c0] ss:$16 sps:$4 sm:$0xff]  }
 0x180   :  { %2137 = vmatmul.mubr.bf16.vlgmr.msra.gmra.mrb[4].mxu1 %v5867_v14 }
 0x181   :  { %2219 = vmatmul.mubr.bf16.vlgmr.msra.gmra.mrb[4].mxu0 %v5853_v7  ;;  %3455 = vmatpush1.bf16.msra.mxu1 %v5161_v24  ;;  %v5140_v7 = vld [vmem:[#allocation5 + $0x6a0] ss:$24 sps:$4 sm:$0xff]  }
 0x182   :  { %2228 = vmatpush1.bf16.msra.mxu0 %v5131_v23  ;;  %3456 = vmatprep.subr.bf16.mxu1 %v5169_v26  ;;  %v5253_v23 = vld [vmem:[#allocation8 + $0x1e4] ss:$16 sps:$4 sm:$0xff]   ;;  %v5202_v26 = vld [vmem:[#allocation8 + $0xc] ss:$16 sps:$4 sm:$0xff]  }
 0x183   :  { %2229 = vmatprep.subr.bf16.mxu0 %v5136_v25  ;;  %2259 = vmatprep.mubr.bf16.mxu0 %v5862_v34  ;;  %v5185_v34 = vld [vmem:[#allocation8 + $0x80] ss:$16 sps:$4 sm:$0xff]  }
 0x184   :  { %v5194_v24 = vld [vmem:[#allocation5 + $0x8e0] ss:$24 sps:$4 sm:$0xff]  }
 0x185   :  { %3457 = vmatpush1.bf16.msra.mxu1 %v5167_v28  ;;  %v5251_v25 = vld [vmem:[#allocation8 + $0x1e0] ss:$16 sps:$4 sm:$0xff]   ;;  %v5200_v28 = vld [vmem:[#allocation8 + $0x8] ss:$16 sps:$4 sm:$0xff]  }
 0x186   :  { %2230 = vmatpush1.bf16.msra.mxu0 %v5134_v27  ;;  %3458 = vmatprep.subr.bf16.mxu1 %v5175_v30  ;;  %v5277_v27 = vld [vmem:[#allocation8 + $0x204] ss:$16 sps:$4 sm:$0xff]   ;;  %v5206_v30 = vld [vmem:[#allocation8 + $0x28] ss:$16 sps:$4 sm:$0xff]  }
 0x187   :  { %2231 = vmatprep.subr.bf16.mxu0 %v5139_v29  ;;  %v5208_v29 = vld [vmem:[#allocation8 + $0x2c] ss:$16 sps:$4 sm:$0xff]  }
 0x189   :  { %3459 = vmatpush1.bf16.msra.mxu1 %v5173_v47  ;;  %v5212_v47 = vld [vmem:[#allocation8 + $0x48] ss:$16 sps:$4 sm:$0xff]  }
 0x18a   :  { %2232 = vmatpush1.bf16.msra.mxu0 %v5137_v6  ;;  %3460 = vmatprep.subr.bf16.mxu1 %v5181_v32  ;;  %v408_v6 = vlaneseq }
 0x18b   :  { %2233 = vmatprep.subr.bf16.mxu0 %v5142_v31  ;;  %v5214_v31 = vld [vmem:[#allocation8 + $0x4c] ss:$16 sps:$4 sm:$0xff]  }
 0x18c   :  { %v5886_v32 = vshrl.u32 %v408_v6, 7 }
 0x18d   :  { %3461 = vmatpush1.bf16.msra.mxu1 %v5179_v35 }
 0x18e   :  { %2234 = vmatpush1.bf16.msra.mxu0 %v5140_v7  ;;  %3462 = vmatprep.subr.bf16.mxu1 %v5187_v36  ;;  %v5220_v7 = vld [vmem:[#allocation8 + $0x6c] ss:$16 sps:$4 sm:$0xff]   ;;  %v410_v35 = vsub.s32 0, %v5886_v32 }
 0x18f   :  { %2235 = vmatprep.subr.bf16.mxu0 %v5145_v33  ;;  %v5218_v33 = vld [vmem:[#allocation8 + $0x68] ss:$16 sps:$4 sm:$0xff]   ;;  %v5226_v36 = vld [vmem:[#allocation8 + $0x8c] ss:$16 sps:$4 sm:$0xff]  }
 0x191   :  { %3463 = vmatpush1.bf16.msra.mxu1 %v5185_v34 }
 0x192   :  { %2236 = vmatpush1.bf16.msra.mxu0 %v5143_v51  ;;  %3464 = vmatprep.subr.bf16.mxu1 %v5193_v38  ;;  %v5889_v51 = vld [vmem:[#allocation7] sm:$0x3f] }
 0x193   :  { %2237 = vmatprep.subr.bf16.mxu0 %v5148_v37  ;;  %v5880_v43 = vpop.f32.mrb[0].mxu1  ;;  %v5224_v37 = vld [vmem:[#allocation8 + $0x88] ss:$16 sps:$4 sm:$0xff]   ;;  %v411_v34 = vrot.slane %v5889_v51, %v410_v35  ;;  %v5232_v38 = vld [vmem:[#allocation8 + $0xac] ss:$16 sps:$4 sm:$0xff]  }
 0x194   :  { %v5882_v44 = vpop.f32.mrb[1].mxu1 }
 0x195   :  { %v1937_v45 = vpop.f32.mrb[2].mxu1  ;;  %3465 = vmatpush1.bf16.msra.mxu1 %v5191_v41  ;;  %v1934_v41 = vadd.f32 %v5880_v43, %v411_v34  ;;  %v5250_v43 = vld [vmem:[#allocation8 + $0x10c] ss:$16 sps:$4 sm:$0xff]   ;;  %v5290_v34 = vld [vmem:[#allocation8 + $0x248] ss:$16 sps:$4 sm:$0xff]  }
 0x196   :  { %2238 = vmatpush1.bf16.msra.mxu0 %v5146_v39  ;;  %v1938_v49 = vpop.f32.mrb[3].mxu1  ;;  %3466 = vmatprep.subr.bf16.mxu1 %v5199_v42  ;;  %v5238_v42 = vld [vmem:[#allocation8 + $0xcc] ss:$16 sps:$4 sm:$0xff]  }
 0x197   :  { %2239 = vmatprep.subr.bf16.mxu0 %v5151_v40  ;;  %v5230_v40 = vld [vmem:[#allocation8 + $0xa8] ss:$16 sps:$4 sm:$0xff]  }
 0x199   :  { %3467 = vmatpush1.bf16.msra.mxu1 %v5197_v48 }
 0x19a   :  { %2240 = vmatpush1.bf16.msra.mxu0 %v5149_v46  ;;  %3468 = vmatprep.subr.bf16.mxu1 %v5205_v52 }
 0x19b   :  { %2241 = vmatprep.subr.bf16.mxu0 %v5154_v50 }
 0x19d   :  { %3469 = vmatpush1.bf16.msra.mxu1 %v5203_v55  ;;  %v5244_v55 = vld [vmem:[#allocation8 + $0xec] ss:$16 sps:$4 sm:$0xff]  }
 0x19e   :  { %2242 = vmatpush1.bf16.msra.mxu0 %v5152_v53  ;;  %3470 = vmatprep.subr.bf16.mxu1 %v5211_v56  ;;  %v5236_v53 = vld [vmem:[#allocation8 + $0xc8] ss:$16 sps:$4 sm:$0xff]  }
 0x19f   :  { %2243 = vmatprep.subr.bf16.mxu0 %v5157_v54  ;;  %v5242_v56 = vld [vmem:[#allocation8 + $0xe8] ss:$16 sps:$4 sm:$0xff]  }
 0x1a1   :  { %3471 = vmatpush1.bf16.msra.mxu1 %v5209_v59 }
 0x1a2   :  { %2244 = vmatpush1.bf16.msra.mxu0 %v5155_v57  ;;  %3472 = vmatprep.subr.bf16.mxu1 %v5217_v60  ;;  %v5248_v57 = vld [vmem:[#allocation8 + $0x108] ss:$16 sps:$4 sm:$0xff]  }
 0x1a3   :  { %2245 = vmatprep.subr.bf16.mxu0 %v5160_v58  ;;  %v5254_v60 = vld [vmem:[#allocation8 + $0x128] ss:$16 sps:$4 sm:$0xff]  }
 0x1a5   :  { %3473 = vmatpush1.bf16.msra.mxu1 %v5215_v63  ;;  %v5275_v63 = vld [vmem:[#allocation8 + $0x200] ss:$16 sps:$4 sm:$0xff]  }
 0x1a6   :  { %2246 = vmatpush1.bf16.msra.mxu0 %v5158_v61  ;;  %3474 = vmatprep.subr.bf16.mxu1 %v5223_v0 }
 0x1a7   :  { %2247 = vmatprep.subr.bf16.mxu0 %v5166_v62  ;;  %v5259_v62 = vld [vmem:[#allocation8 + $0x14c] ss:$16 sps:$4 sm:$0xff]  }
 0x1a9   :  { %3475 = vmatpush1.bf16.msra.mxu1 %v5221_v3  ;;  %v5262_v3 = vld [vmem:[#allocation8 + $0x16c] ss:$16 sps:$4 sm:$0xff]  }
 0x1aa   :  { %2248 = vmatpush1.bf16.msra.mxu0 %v5164_v1  ;;  %3476 = vmatprep.subr.bf16.mxu1 %v5229_v4  ;;  %v5283_v1 = vld [vmem:[#allocation8 + $0x224] ss:$16 sps:$4 sm:$0xff]   ;;  %v5281_v4 = vld [vmem:[#allocation8 + $0x220] ss:$16 sps:$4 sm:$0xff]  }
 0x1ab   :  { %2249 = vmatprep.subr.bf16.mxu0 %v5172_v2  ;;  %v5257_v2 = vld [vmem:[#allocation8 + $0x148] ss:$16 sps:$4 sm:$0xff]  }
 0x1ad   :  { %3477 = vmatpush1.bf16.msra.mxu1 %v5227_v9  ;;  %v5265_v9 = vld [vmem:[#allocation8 + $0x18c] ss:$16 sps:$4 sm:$0xff]  }
 0x1ae   :  { %2250 = vmatpush1.bf16.msra.mxu0 %v5170_v5  ;;  %3478 = vmatprep.subr.bf16.mxu1 %v5235_v10  ;;  %v5289_v5 = vld [vmem:[#allocation8 + $0x244] ss:$16 sps:$4 sm:$0xff]   ;;  %v5287_v10 = vld [vmem:[#allocation8 + $0x240] ss:$16 sps:$4 sm:$0xff]  }
 0x1af   :  { %2251 = vmatprep.subr.bf16.mxu0 %v5178_v8  ;;  %v5260_v8 = vld [vmem:[#allocation8 + $0x168] ss:$16 sps:$4 sm:$0xff]  }
 0x1b1   :  { %3479 = vmatpush1.bf16.msra.mxu1 %v5233_v12  ;;  %v5263_v12 = vld [vmem:[#allocation8 + $0x188] ss:$16 sps:$4 sm:$0xff]  }
 0x1b2   :  { %2252 = vmatpush1.bf16.msra.mxu0 %v5176_v11  ;;  %3480 = vmatprep.subr.bf16.mxu1 %v5241_v15  ;;  %v5295_v11 = vld [vmem:[#allocation8 + $0x264] ss:$16 sps:$4 sm:$0xff]   ;;  %v5293_v15 = vld [vmem:[#allocation8 + $0x260] ss:$16 sps:$4 sm:$0xff]  }
 0x1b3   :  { %2253 = vmatprep.subr.bf16.mxu0 %v5184_v13  ;;  %v5268_v13 = vld [vmem:[#allocation8 + $0x1ac] ss:$16 sps:$4 sm:$0xff]  }
 0x1b5   :  { %3481 = vmatpush1.bf16.msra.mxu1 %v5239_v17  ;;  %v5266_v17 = vld [vmem:[#allocation8 + $0x1a8] ss:$16 sps:$4 sm:$0xff]  }
 0x1b6   :  { %2254 = vmatpush1.bf16.msra.mxu0 %v5182_v16  ;;  %3482 = vmatprep.subr.bf16.mxu1 %v5247_v19  ;;  %v5301_v16 = vld [vmem:[#allocation8 + $0x284] ss:$16 sps:$4 sm:$0xff]   ;;  %v5299_v19 = vld [vmem:[#allocation8 + $0x280] ss:$16 sps:$4 sm:$0xff]  }
 0x1b7   :  { %2255 = vmatprep.subr.bf16.mxu0 %v5190_v18  ;;  %v5271_v18 = vld [vmem:[#allocation8 + $0x1cc] ss:$16 sps:$4 sm:$0xff]  }
 0x1b9   :  { %3483 = vmatpush1.bf16.msra.mxu1 %v5245_v21  ;;  %v5269_v21 = vld [vmem:[#allocation8 + $0x1c8] ss:$16 sps:$4 sm:$0xff]  }
 0x1ba   :  { %2256 = vmatpush1.bf16.msra.mxu0 %v5188_v20  ;;  %3484 = vmatprep.subr.bf16.mxu1 %v5253_v23  ;;  %v5307_v20 = vld [vmem:[#allocation8 + $0x2a4] ss:$16 sps:$4 sm:$0xff]   ;;  %v5305_v23 = vld [vmem:[#allocation8 + $0x2a0] ss:$16 sps:$4 sm:$0xff]  }
 0x1bb   :  { %2257 = vmatprep.subr.bf16.mxu0 %v5196_v22  ;;  %v5274_v22 = vld [vmem:[#allocation8 + $0x1ec] ss:$16 sps:$4 sm:$0xff]  }
 0x1bd   :  { %3485 = vmatpush1.bf16.msra.mxu1 %v5251_v25  ;;  %v5272_v25 = vld [vmem:[#allocation8 + $0x1e8] ss:$16 sps:$4 sm:$0xff]  }
 0x1be   :  { %2258 = vmatpush1.bf16.msra.mxu0 %v5194_v24  ;;  %3495 = vmatprep.subr.bf16.mxu1 %v5277_v27  ;;  %v5313_v24 = vld [vmem:[#allocation8 + $0x2c4] ss:$16 sps:$4 sm:$0xff]   ;;  %v5311_v27 = vld [vmem:[#allocation8 + $0x2c0] ss:$16 sps:$4 sm:$0xff]  }
 0x1bf   :  { %3577 = vmatprep.subr.bf16.mxu0 %v5202_v26  ;;  %v5280_v26 = vld [vmem:[#allocation8 + $0x20c] ss:$16 sps:$4 sm:$0xff]  }
 0x1c1   :  { %2260 = vmatmul.mubr.bf16.vlgmr.msra.gmra.mrb[4].mxu0 %v5867_v14  ;;  %v414_v14 = vsub.s32 1, %v5886_v32 }
 0x1c2   :  { %3578 = vmatpush1.bf16.msra.mxu0 %v5200_v28  ;;  %v5319_v28 = vld [vmem:[#allocation8 + $0x2e4] ss:$16 sps:$4 sm:$0xff]  }
 0x1c3   :  { %3579 = vmatprep.subr.bf16.mxu0 %v5208_v29  ;;  %v415_v39 = vrot.slane %v5889_v51, %v414_v14  ;;  %v5278_v29 = vld [vmem:[#allocation8 + $0x208] ss:$16 sps:$4 sm:$0xff]  }
 0x1c5   :  { %v1936_v45 = vadd.f32 %v5882_v44, %v415_v39  ;;  %v5256_v44 = vld [vmem:[#allocation8 + $0x12c] ss:$16 sps:$4 sm:$0xff]   ;;  %v5329_v39 = vld [vmem:[#allocation8 + $0x320] ss:$16 sps:$4 sm:$0xff]  }
 0x1c6   :  { %3580 = vmatpush1.bf16.msra.mxu0 %v5206_v30  ;;  %v5286_v30 = vld [vmem:[#allocation8 + $0x22c] ss:$16 sps:$4 sm:$0xff]  }
 0x1c7   :  { %3581 = vmatprep.subr.bf16.mxu0 %v5214_v31  ;;  %v5317_v31 = vld [vmem:[#allocation8 + $0x2e0] ss:$16 sps:$4 sm:$0xff]  }
 0x1ca   :  { %3582 = vmatpush1.bf16.msra.mxu0 %v5212_v47  ;;  %v5325_v47 = vld [vmem:[#allocation8 + $0x304] ss:$16 sps:$4 sm:$0xff]  }
 0x1cb   :  { %3583 = vmatprep.subr.bf16.mxu0 %v5220_v7  ;;  %v5284_v7 = vld [vmem:[#allocation8 + $0x228] ss:$16 sps:$4 sm:$0xff]  }
 0x1ce   :  { %3584 = vmatpush1.bf16.msra.mxu0 %v5218_v33  ;;  %v5292_v33 = vld [vmem:[#allocation8 + $0x24c] ss:$16 sps:$4 sm:$0xff]  }
 0x1cf   :  { %3585 = vmatprep.subr.bf16.mxu0 %v5226_v36  ;;  %v5323_v36 = vld [vmem:[#allocation8 + $0x300] ss:$16 sps:$4 sm:$0xff]  }
 0x1d2   :  { %3586 = vmatpush1.bf16.msra.mxu0 %v5224_v37  ;;  %v5331_v37 = vld [vmem:[#allocation8 + $0x324] ss:$16 sps:$4 sm:$0xff]  }
 0x1d3   :  { %3587 = vmatprep.subr.bf16.mxu0 %v5232_v38  ;;  %v5298_v38 = vld [vmem:[#allocation8 + $0x26c] ss:$16 sps:$4 sm:$0xff]  }
 0x1d4   :  { %v2015_v46 = vpop.f32.mrb[0].mxu0 }
 0x1d5   :  { %v4676_v48 = vadd.f32 %v2015_v46, %v1934_v41  ;;  %v2017_v49 = vpop.f32.mrb[1].mxu0  ;;  %v5296_v41 = vld [vmem:[#allocation8 + $0x268] ss:$16 sps:$4 sm:$0xff]   ;;  %v5343_v46 = vld [vmem:[#allocation8 + $0x364] ss:$16 sps:$4 sm:$0xff]  }
 0x1d6   :  { %v4678_v50 = vadd.f32 %v2017_v49, %v1936_v45  ;;  %v2019_v52 = vpop.f32.mrb[2].mxu0  ;;  %3588 = vmatpush1.bf16.msra.mxu0 %v5230_v40  ;;  %v5337_v40 = vld [vmem:[#allocation8 + $0x344] ss:$16 sps:$4 sm:$0xff]   ;;  %v5335_v45 = vld [vmem:[#allocation8 + $0x340] ss:$16 sps:$4 sm:$0xff]  }
 0x1d7   :  { %5499 = vtanh.f32 %v4676_v48  ;;  %v2020_v54 = vpop.f32.mrb[3].mxu0  ;;  %3589 = vmatprep.subr.bf16.mxu0 %v5238_v42  ;;  %v5304_v42 = vld [vmem:[#allocation8 + $0x28c] ss:$16 sps:$4 sm:$0xff]   ;;  %v5302_v48 = vld [vmem:[#allocation8 + $0x288] ss:$16 sps:$4 sm:$0xff]  }
 0x1d8   :  { %5501 = vtanh.f32 %v4678_v50  ;;  %v5310_v49 = vld [vmem:[#allocation8 + $0x2ac] ss:$16 sps:$4 sm:$0xff]   ;;  %v5341_v50 = vld [vmem:[#allocation8 + $0x360] ss:$16 sps:$4 sm:$0xff]   ;;  %v5349_v52 = vld [vmem:[#allocation8 + $0x384] ss:$16 sps:$4 sm:$0xff]  }
 0x1d9   :  { %v5316_v54 = vld [vmem:[#allocation8 + $0x2cc] ss:$16 sps:$4 sm:$0xff]  }
 0x1da   :  { %3590 = vmatpush1.bf16.msra.mxu0 %v5236_v53  ;;  %v5308_v53 = vld [vmem:[#allocation8 + $0x2a8] ss:$16 sps:$4 sm:$0xff]  }
 0x1db   :  { %3591 = vmatprep.subr.bf16.mxu0 %v5244_v55  ;;  %v5347_v55 = vld [vmem:[#allocation8 + $0x380] ss:$16 sps:$4 sm:$0xff]  }
 0x1de   :  { %3592 = vmatpush1.bf16.msra.mxu0 %v5242_v56  ;;  %v5355_v56 = vld [vmem:[#allocation8 + $0x3a4] ss:$16 sps:$4 sm:$0xff]  }
 0x1df   :  { %3593 = vmatprep.subr.bf16.mxu0 %v5250_v43  ;;  %v5314_v43 = vld [vmem:[#allocation8 + $0x2c8] ss:$16 sps:$4 sm:$0xff]  }
 0x1e1   :  { %v5500_v58 = vpop.eup %5499 }
 0x1e2   :  { %v5502_v59 = vpop.eup %5501  ;;  %3594 = vmatpush1.bf16.msra.mxu0 %v5248_v57  ;;  %v2274_v0 = vpack.c.bf16 %v5500_v58, %v5500_v58  ;;  %v5322_v57 = vld [vmem:[#allocation8 + $0x2ec] ss:$16 sps:$4 sm:$0xff]   ;;  %v5361_v58 = vld [vmem:[#allocation8 + $0x3c4] ss:$16 sps:$4 sm:$0xff]  }
 0x1e3   :  { %v2275_v61 = vpack.c.bf16 %v5502_v59, %v5502_v59  ;;  %3595 = vmatprep.subr.bf16.mxu0 %v5256_v44  ;;  %v5353_v44 = vld [vmem:[#allocation8 + $0x3a0] ss:$16 sps:$4 sm:$0xff]   ;;  %v5320_v59 = vld [vmem:[#allocation8 + $0x2e8] ss:$16 sps:$4 sm:$0xff]  }
 0x1e5   :  { %3486 = vmatprep.mubr.bf16.mxu1 %v2275_v61  ;;  %3609 = vmatprep.mubr.bf16.mxu0 %v2275_v61  ;;  %v5359_v61 = vld [vmem:[#allocation8 + $0x3c0] ss:$16 sps:$4 sm:$0xff]  }
 0x1e6   :  { %3487 = vmatmul.mubr.bf16.vlgmr.msra.gmra.mrb[8].mxu1 %v2274_v0  ;;  %3596 = vmatpush1.bf16.msra.mxu0 %v5254_v60  ;;  %v5328_v60 = vld [vmem:[#allocation8 + $0x30c] ss:$16 sps:$4 sm:$0xff]  }
 0x1e7   :  { %3597 = vmatprep.subr.bf16.mxu0 %v5259_v62  ;;  %3496 = vmatpush1.bf16.msra.mxu1 %v5275_v63  ;;  %v5367_v62 = vld [vmem:[#allocation8 + $0x3e4] ss:$16 sps:$4 sm:$0xff]   ;;  %v5326_v63 = vld [vmem:[#allocation8 + $0x308] ss:$16 sps:$4 sm:$0xff]  }
 0x1e8   :  { %3497 = vmatprep.subr.bf16.mxu1 %v5283_v1  ;;  %v5365_v1 = vld [vmem:[#allocation8 + $0x3e0] ss:$16 sps:$4 sm:$0xff]  }
 0x1ea   :  { %3598 = vmatpush1.bf16.msra.mxu0 %v5257_v2  ;;  %v5373_v2 = vld [vmem:[#allocation8 + $0x404] ss:$16 sps:$4 sm:$0xff]  }
 0x1eb   :  { %3599 = vmatprep.subr.bf16.mxu0 %v5262_v3  ;;  %3498 = vmatpush1.bf16.msra.mxu1 %v5281_v4  ;;  %v5332_v3 = vld [vmem:[#allocation8 + $0x328] ss:$16 sps:$4 sm:$0xff]   ;;  %v5340_v4 = vld [vmem:[#allocation8 + $0x34c] ss:$16 sps:$4 sm:$0xff]  }
 0x1ec   :  { %3499 = vmatprep.subr.bf16.mxu1 %v5289_v5  ;;  %v5338_v5 = vld [vmem:[#allocation8 + $0x348] ss:$16 sps:$4 sm:$0xff]  }
 0x1ee   :  { %3600 = vmatpush1.bf16.msra.mxu0 %v5260_v8  ;;  %v5346_v8 = vld [vmem:[#allocation8 + $0x36c] ss:$16 sps:$4 sm:$0xff]  }
 0x1ef   :  { %3601 = vmatprep.subr.bf16.mxu0 %v5265_v9  ;;  %3500 = vmatpush1.bf16.msra.mxu1 %v5287_v10  ;;  %v5344_v9 = vld [vmem:[#allocation8 + $0x368] ss:$16 sps:$4 sm:$0xff]   ;;  %v5352_v10 = vld [vmem:[#allocation8 + $0x38c] ss:$16 sps:$4 sm:$0xff]  }
 0x1f0   :  { %3501 = vmatprep.subr.bf16.mxu1 %v5295_v11  ;;  %v5350_v11 = vld [vmem:[#allocation8 + $0x388] ss:$16 sps:$4 sm:$0xff]  }
 0x1f2   :  { %3602 = vmatpush1.bf16.msra.mxu0 %v5263_v12  ;;  %v5358_v12 = vld [vmem:[#allocation8 + $0x3ac] ss:$16 sps:$4 sm:$0xff]  }
 0x1f3   :  { %3603 = vmatprep.subr.bf16.mxu0 %v5268_v13  ;;  %3502 = vmatpush1.bf16.msra.mxu1 %v5293_v15  ;;  %v5356_v13 = vld [vmem:[#allocation8 + $0x3a8] ss:$16 sps:$4 sm:$0xff]   ;;  %v5364_v15 = vld [vmem:[#allocation8 + $0x3cc] ss:$16 sps:$4 sm:$0xff]  }
 0x1f4   :  { %3503 = vmatprep.subr.bf16.mxu1 %v5301_v16  ;;  %v5362_v16 = vld [vmem:[#allocation8 + $0x3c8] ss:$16 sps:$4 sm:$0xff]  }
 0x1f6   :  { %3604 = vmatpush1.bf16.msra.mxu0 %v5266_v17  ;;  %v5370_v17 = vld [vmem:[#allocation8 + $0x3ec] ss:$16 sps:$4 sm:$0xff]  }
 0x1f7   :  { %3605 = vmatprep.subr.bf16.mxu0 %v5271_v18  ;;  %3504 = vmatpush1.bf16.msra.mxu1 %v5299_v19  ;;  %v5368_v18 = vld [vmem:[#allocation8 + $0x3e8] ss:$16 sps:$4 sm:$0xff]   ;;  %v5376_v19 = vld [vmem:[#allocation8 + $0x40c] ss:$16 sps:$4 sm:$0xff]  }
 0x1f8   :  { %3505 = vmatprep.subr.bf16.mxu1 %v5307_v20  ;;  %v418_v20 = vsub.s32 2, %v5886_v32 }
 0x1fa   :  { %3606 = vmatpush1.bf16.msra.mxu0 %v5269_v21  ;;  %v422_v21 = vsub.s32 3, %v5886_v32 }
 0x1fb   :  { %3607 = vmatprep.subr.bf16.mxu0 %v5274_v22  ;;  %3506 = vmatpush1.bf16.msra.mxu1 %v5305_v23  ;;  %v419_v22 = vrot.slane %v5889_v51, %v418_v20 }
 0x1fc   :  { %3507 = vmatprep.subr.bf16.mxu1 %v5313_v24  ;;  %v423_v23 = vrot.slane %v5889_v51, %v422_v21 }
 0x1fe   :  { %3608 = vmatpush1.bf16.msra.mxu0 %v5272_v25 }
 0x1ff   :  { %3618 = vmatprep.subr.bf16.mxu0 %v5280_v26  ;;  %3508 = vmatpush1.bf16.msra.mxu1 %v5311_v27 }
 0x200   :  { %3509 = vmatprep.subr.bf16.mxu1 %v5319_v28 }
 0x201   :  { %3610 = vmatmul.mubr.bf16.vlgmr.msra.gmra.mrb[8].mxu0 %v2274_v0  ;;  %v5334_v0 = vld [vmem:[#allocation8 + $0x32c] ss:$16 sps:$4 sm:$0xff]  }
 0x202   :  { %3619 = vmatpush1.bf16.msra.mxu0 %v5278_v29 }
 0x203   :  { %3620 = vmatprep.subr.bf16.mxu0 %v5286_v30  ;;  %3510 = vmatpush1.bf16.msra.mxu1 %v5317_v31 }
 0x204   :  { %3511 = vmatprep.subr.bf16.mxu1 %v5325_v47 }
 0x206   :  { %3621 = vmatpush1.bf16.msra.mxu0 %v5284_v7  ;;  %v5371_v7 = vld [vmem:[#allocation8 + $0x400] ss:$16 sps:$4 sm:$0xff]  }
 0x207   :  { %3622 = vmatprep.subr.bf16.mxu0 %v5292_v33  ;;  %3512 = vmatpush1.bf16.msra.mxu1 %v5323_v36  ;;  %v5374_v33 = vld [vmem:[#allocation8 + $0x408] ss:$16 sps:$4 sm:$0xff]  }
 0x208   :  { %3513 = vmatprep.subr.bf16.mxu1 %v5331_v37  ;;  %v5379_v37 = vld [vmem:[#allocation8 + $0x424] ss:$16 sps:$4 sm:$0xff]  }
 0x20a   :  { %3623 = vmatpush1.bf16.msra.mxu0 %v5290_v34  ;;  %v5382_v34 = vld [vmem:[#allocation8 + $0x42c] ss:$16 sps:$4 sm:$0xff]  }
 0x20b   :  { %3624 = vmatprep.subr.bf16.mxu0 %v5298_v38  ;;  %3514 = vmatpush1.bf16.msra.mxu1 %v5329_v39  ;;  %v5377_v38 = vld [vmem:[#allocation8 + $0x420] ss:$16 sps:$4 sm:$0xff]   ;;  %v5380_v39 = vld [vmem:[#allocation8 + $0x428] ss:$16 sps:$4 sm:$0xff]  }
 0x20c   :  { %3515 = vmatprep.subr.bf16.mxu1 %v5337_v40  ;;  %v5385_v40 = vld [vmem:[#allocation8 + $0x444] ss:$16 sps:$4 sm:$0xff]  }
 0x20e   :  { %3625 = vmatpush1.bf16.msra.mxu0 %v5296_v41  ;;  %v5388_v41 = vld [vmem:[#allocation8 + $0x44c] ss:$16 sps:$4 sm:$0xff]  }
 0x20f   :  { %3626 = vmatprep.subr.bf16.mxu0 %v5304_v42  ;;  %3516 = vmatpush1.bf16.msra.mxu1 %v5335_v45  ;;  %v5383_v42 = vld [vmem:[#allocation8 + $0x440] ss:$16 sps:$4 sm:$0xff]   ;;  %v5386_v45 = vld [vmem:[#allocation8 + $0x448] ss:$16 sps:$4 sm:$0xff]  }
 0x210   :  { %3517 = vmatprep.subr.bf16.mxu1 %v5343_v46  ;;  %v5391_v46 = vld [vmem:[#allocation8 + $0x464] ss:$16 sps:$4 sm:$0xff]  }
 0x212   :  { %3627 = vmatpush1.bf16.msra.mxu0 %v5302_v48  ;;  %v5394_v48 = vld [vmem:[#allocation8 + $0x46c] ss:$16 sps:$4 sm:$0xff]  }
 0x213   :  { %3628 = vmatprep.subr.bf16.mxu0 %v5310_v49  ;;  %3518 = vmatpush1.bf16.msra.mxu1 %v5341_v50  ;;  %v5389_v49 = vld [vmem:[#allocation8 + $0x460] ss:$16 sps:$4 sm:$0xff]   ;;  %v5392_v50 = vld [vmem:[#allocation8 + $0x468] ss:$16 sps:$4 sm:$0xff]  }
 0x214   :  { %3519 = vmatprep.subr.bf16.mxu1 %v5349_v52  ;;  %v5397_v52 = vld [vmem:[#allocation8 + $0x484] ss:$16 sps:$4 sm:$0xff]  }
 0x216   :  { %3629 = vmatpush1.bf16.msra.mxu0 %v5308_v53  ;;  %v5400_v53 = vld [vmem:[#allocation8 + $0x48c] ss:$16 sps:$4 sm:$0xff]  }
 0x217   :  { %3630 = vmatprep.subr.bf16.mxu0 %v5316_v54  ;;  %3520 = vmatpush1.bf16.msra.mxu1 %v5347_v55  ;;  %v5395_v54 = vld [vmem:[#allocation8 + $0x480] ss:$16 sps:$4 sm:$0xff]   ;;  %v5398_v55 = vld [vmem:[#allocation8 + $0x488] ss:$16 sps:$4 sm:$0xff]  }
 0x218   :  { %3521 = vmatprep.subr.bf16.mxu1 %v5355_v56  ;;  %v5403_v56 = vld [vmem:[#allocation8 + $0x4a4] ss:$16 sps:$4 sm:$0xff]  }
 0x21a   :  { %3631 = vmatpush1.bf16.msra.mxu0 %v5314_v43  ;;  %v5406_v43 = vld [vmem:[#allocation8 + $0x4ac] ss:$16 sps:$4 sm:$0xff]  }
 0x21b   :  { %3632 = vmatprep.subr.bf16.mxu0 %v5322_v57  ;;  %3522 = vmatpush1.bf16.msra.mxu1 %v5353_v44  ;;  %v5401_v57 = vld [vmem:[#allocation8 + $0x4a0] ss:$16 sps:$4 sm:$0xff]   ;;  %v5404_v44 = vld [vmem:[#allocation8 + $0x4a8] ss:$16 sps:$4 sm:$0xff]  }
 0x21c   :  { %3523 = vmatprep.subr.bf16.mxu1 %v5361_v58  ;;  %v5409_v58 = vld [vmem:[#allocation8 + $0x4c4] ss:$16 sps:$4 sm:$0xff]  }
 0x21e   :  { %3633 = vmatpush1.bf16.msra.mxu0 %v5320_v59  ;;  %v5412_v59 = vld [vmem:[#allocation8 + $0x4cc] ss:$16 sps:$4 sm:$0xff]  }
 0x21f   :  { %3634 = vmatprep.subr.bf16.mxu0 %v5328_v60  ;;  %3524 = vmatpush1.bf16.msra.mxu1 %v5359_v61  ;;  %v5407_v60 = vld [vmem:[#allocation8 + $0x4c0] ss:$16 sps:$4 sm:$0xff]   ;;  %v5410_v61 = vld [vmem:[#allocation8 + $0x4c8] ss:$16 sps:$4 sm:$0xff]  }
 0x220   :  { %3525 = vmatprep.subr.bf16.mxu1 %v5367_v62  ;;  %v5415_v62 = vld [vmem:[#allocation8 + $0x4e4] ss:$16 sps:$4 sm:$0xff]  }
 0x222   :  { %3635 = vmatpush1.bf16.msra.mxu0 %v5326_v63  ;;  %v5418_v63 = vld [vmem:[#allocation8 + $0x4ec] ss:$16 sps:$4 sm:$0xff]  }
 0x223   :  { %3636 = vmatprep.subr.bf16.mxu0 %v5334_v0  ;;  %3526 = vmatpush1.bf16.msra.mxu1 %v5365_v1  ;;  %v5413_v0 = vld [vmem:[#allocation8 + $0x4e0] ss:$16 sps:$4 sm:$0xff]   ;;  %v5416_v1 = vld [vmem:[#allocation8 + $0x4e8] ss:$16 sps:$4 sm:$0xff]  }
 0x224   :  { %3536 = vmatprep.subr.bf16.mxu1 %v5373_v2  ;;  %v5421_v2 = vld [vmem:[#allocation8 + $0x504] ss:$16 sps:$4 sm:$0xff]  }
 0x226   :  { %3637 = vmatpush1.bf16.msra.mxu0 %v5332_v3  ;;  %v5424_v3 = vld [vmem:[#allocation8 + $0x50c] ss:$16 sps:$4 sm:$0xff]  }
 0x227   :  { %3638 = vmatprep.subr.bf16.mxu0 %v5340_v4  ;;  %v5419_v4 = vld [vmem:[#allocation8 + $0x500] ss:$16 sps:$4 sm:$0xff]  }
 0x22a   :  { %3639 = vmatpush1.bf16.msra.mxu0 %v5338_v5  ;;  %v5422_v5 = vld [vmem:[#allocation8 + $0x508] ss:$16 sps:$4 sm:$0xff]  }
 0x22b   :  { %3640 = vmatprep.subr.bf16.mxu0 %v5346_v8  ;;  %v5427_v8 = vld [vmem:[#allocation8 + $0x524] ss:$16 sps:$4 sm:$0xff]  }
 0x22e   :  { %3641 = vmatpush1.bf16.msra.mxu0 %v5344_v9  ;;  %v5430_v9 = vld [vmem:[#allocation8 + $0x52c] ss:$16 sps:$4 sm:$0xff]  }
 0x22f   :  { %3642 = vmatprep.subr.bf16.mxu0 %v5352_v10  ;;  %v5425_v10 = vld [vmem:[#allocation8 + $0x520] ss:$16 sps:$4 sm:$0xff]  }
 0x232   :  { %3643 = vmatpush1.bf16.msra.mxu0 %v5350_v11  ;;  %v5428_v11 = vld [vmem:[#allocation8 + $0x528] ss:$16 sps:$4 sm:$0xff]  }
 0x233   :  { %3644 = vmatprep.subr.bf16.mxu0 %v5358_v12  ;;  %v5433_v12 = vld [vmem:[#allocation8 + $0x544] ss:$16 sps:$4 sm:$0xff]  }
 0x236   :  { %3645 = vmatpush1.bf16.msra.mxu0 %v5356_v13  ;;  %v5436_v13 = vld [vmem:[#allocation8 + $0x54c] ss:$16 sps:$4 sm:$0xff]  }
 0x237   :  { %3646 = vmatprep.subr.bf16.mxu0 %v5364_v15  ;;  %v5431_v15 = vld [vmem:[#allocation8 + $0x540] ss:$16 sps:$4 sm:$0xff]  }
 0x23a   :  { %3647 = vmatpush1.bf16.msra.mxu0 %v5362_v16  ;;  %v5434_v16 = vld [vmem:[#allocation8 + $0x548] ss:$16 sps:$4 sm:$0xff]  }
 0x23b   :  { %3648 = vmatprep.subr.bf16.mxu0 %v5370_v17  ;;  %v5439_v17 = vld [vmem:[#allocation8 + $0x564] ss:$16 sps:$4 sm:$0xff]  }
 0x23e   :  { %3649 = vmatpush1.bf16.msra.mxu0 %v5368_v18  ;;  %v5442_v18 = vld [vmem:[#allocation8 + $0x56c] ss:$16 sps:$4 sm:$0xff]  }
 0x23f   :  { %3659 = vmatprep.subr.bf16.mxu0 %v5376_v19  ;;  %v426_v19 = vsub.s32 4, %v5886_v32 }
 0x253   :  { %v2138_v24 = vpop.f32.mrb[4].mxu1 }
 0x254   :  { %v4679_v25 = vadd.f32 %v2138_v24, %v419_v22  ;;  %v2140_v26 = vpop.f32.mrb[5].mxu1  ;;  %v430_v22 = vsub.s32 5, %v5886_v32  ;;  %v5440_v24 = vld [vmem:[#allocation8 + $0x568] ss:$16 sps:$4 sm:$0xff]  }
 0x255   :  { %v4680_v27 = vadd.f32 %v2140_v26, %v423_v23  ;;  %v2142_v28 = vpop.f32.mrb[6].mxu1  ;;  %v5437_v23 = vld [vmem:[#allocation8 + $0x560] ss:$16 sps:$4 sm:$0xff]   ;;  %v5448_v26 = vld [vmem:[#allocation8 + $0x58c] ss:$16 sps:$4 sm:$0xff]  }
 0x256   :  { %5503 = vtanh.f32 %v4679_v25  ;;  %v2143_v29 = vpop.f32.mrb[7].mxu1  ;;  %v5445_v25 = vld [vmem:[#allocation8 + $0x584] ss:$16 sps:$4 sm:$0xff]   ;;  %v431_v28 = vrot.slane %v5889_v51, %v430_v22 }
 0x257   :  { %5505 = vtanh.f32 %v4680_v27  ;;  %v427_v27 = vrot.slane %v5889_v51, %v426_v19  ;;  %v5443_v29 = vld [vmem:[#allocation8 + $0x580] ss:$16 sps:$4 sm:$0xff]   ;;  %v5457_v51 = vld [vmem:[#allocation8 + $0x5c4] ss:$16 sps:$4 sm:$0xff]  }
 0x260   :  { %v5504_v30 = vpop.eup %5503 }
 0x261   :  { %v5506_v31 = vpop.eup %5505  ;;  %v2276_v36 = vpack.c.bf16 %v5504_v30, %v5504_v30  ;;  %v5446_v30 = vld [vmem:[#allocation8 + $0x588] ss:$16 sps:$4 sm:$0xff]  }
 0x262   :  { %v2277_v47 = vpack.c.bf16 %v5506_v31, %v5506_v31 }
 0x264   :  { %3527 = vmatprep.mubr.bf16.mxu1 %v2277_v47  ;;  %3650 = vmatprep.mubr.bf16.mxu0 %v2277_v47  ;;  %v5451_v47 = vld [vmem:[#allocation8 + $0x5a4] ss:$16 sps:$4 sm:$0xff]  }
 0x265   :  { %3528 = vmatmul.mubr.bf16.vlgmr.msra.gmra.mrb[8].mxu1 %v2276_v36  ;;  %3651 = vmatmul.mubr.bf16.vlgmr.msra.gmra.mrb[8].mxu0 %v2276_v36 }
 0x266   :  { %3537 = vmatpush1.bf16.msra.mxu1 %v5371_v7  ;;  %3660 = vmatpush1.bf16.msra.mxu0 %v5374_v33  ;;  %v5454_v7 = vld [vmem:[#allocation8 + $0x5ac] ss:$16 sps:$4 sm:$0xff]  }
 0x267   :  { %3538 = vmatprep.subr.bf16.mxu1 %v5379_v37  ;;  %3661 = vmatprep.subr.bf16.mxu0 %v5382_v34 }
 0x26a   :  { %3539 = vmatpush1.bf16.msra.mxu1 %v5377_v38  ;;  %3662 = vmatpush1.bf16.msra.mxu0 %v5380_v39  ;;  %v5449_v39 = vld [vmem:[#allocation8 + $0x5a0] ss:$16 sps:$4 sm:$0xff]  }
 0x26b   :  { %3540 = vmatprep.subr.bf16.mxu1 %v5385_v40  ;;  %3663 = vmatprep.subr.bf16.mxu0 %v5388_v41  ;;  %v5452_v40 = vld [vmem:[#allocation8 + $0x5a8] ss:$16 sps:$4 sm:$0xff]   ;;  %v5460_v41 = vld [vmem:[#allocation8 + $0x5cc] ss:$16 sps:$4 sm:$0xff]  }
 0x26e   :  { %3541 = vmatpush1.bf16.msra.mxu1 %v5383_v42  ;;  %3664 = vmatpush1.bf16.msra.mxu0 %v5386_v45  ;;  %v5455_v42 = vld [vmem:[#allocation8 + $0x5c0] ss:$16 sps:$4 sm:$0xff]   ;;  %v5458_v45 = vld [vmem:[#allocation8 + $0x5c8] ss:$16 sps:$4 sm:$0xff]  }
 0x26f   :  { %3542 = vmatprep.subr.bf16.mxu1 %v5391_v46  ;;  %3665 = vmatprep.subr.bf16.mxu0 %v5394_v48  ;;  %v5463_v46 = vld [vmem:[#allocation8 + $0x5e4] ss:$16 sps:$4 sm:$0xff]   ;;  %v5466_v48 = vld [vmem:[#allocation8 + $0x5ec] ss:$16 sps:$4 sm:$0xff]  }
 0x272   :  { %3543 = vmatpush1.bf16.msra.mxu1 %v5389_v49  ;;  %3666 = vmatpush1.bf16.msra.mxu0 %v5392_v50  ;;  %v5461_v49 = vld [vmem:[#allocation8 + $0x5e0] ss:$16 sps:$4 sm:$0xff]   ;;  %v5464_v50 = vld [vmem:[#allocation8 + $0x5e8] ss:$16 sps:$4 sm:$0xff]  }
 0x273   :  { %3544 = vmatprep.subr.bf16.mxu1 %v5397_v52  ;;  %3667 = vmatprep.subr.bf16.mxu0 %v5400_v53  ;;  %v5467_v52 = vld [vmem:[#allocation11 + $0x40] sm:$0xff]  }
 0x276   :  { %3545 = vmatpush1.bf16.msra.mxu1 %v5395_v54  ;;  %3668 = vmatpush1.bf16.msra.mxu0 %v5398_v55 }
 0x277   :  { %3546 = vmatprep.subr.bf16.mxu1 %v5403_v56  ;;  %3669 = vmatprep.subr.bf16.mxu0 %v5406_v43  ;;  %v5468_v56 = vld [vmem:[#allocation11] sm:$0xff]  }
 0x27a   :  { %3547 = vmatpush1.bf16.msra.mxu1 %v5401_v57  ;;  %3670 = vmatpush1.bf16.msra.mxu0 %v5404_v44  ;;  %v5469_v57 = vld [vmem:[#allocation11 + $0x48] sm:$0xff]  }
 0x27b   :  { %3548 = vmatprep.subr.bf16.mxu1 %v5409_v58  ;;  %3671 = vmatprep.subr.bf16.mxu0 %v5412_v59  ;;  %v5470_v44 = vld [vmem:[#allocation11 + $0x8] sm:$0xff]   ;;  %v5471_v58 = vld [vmem:[#allocation11 + $0x50] sm:$0xff]  }
 0x27c   :  { %v5472_v59 = vld [vmem:[#allocation11 + $0x10] sm:$0xff]  }
 0x27e   :  { %3549 = vmatpush1.bf16.msra.mxu1 %v5407_v60  ;;  %3672 = vmatpush1.bf16.msra.mxu0 %v5410_v61  ;;  %v5473_v60 = vld [vmem:[#allocation11 + $0x58] sm:$0xff]  }
 0x27f   :  { %3550 = vmatprep.subr.bf16.mxu1 %v5415_v62  ;;  %3673 = vmatprep.subr.bf16.mxu0 %v5418_v63  ;;  %v5474_v61 = vld [vmem:[#allocation11 + $0x18] sm:$0xff]   ;;  %v5475_v62 = vld [vmem:[#allocation11 + $0x60] sm:$0xff]  }
 0x280   :  { %v5476_v63 = vld [vmem:[#allocation11 + $0x20] sm:$0xff]  }
 0x282   :  { %3551 = vmatpush1.bf16.msra.mxu1 %v5413_v0  ;;  %3674 = vmatpush1.bf16.msra.mxu0 %v5416_v1  ;;  %v5477_v0 = vld [vmem:[#allocation11 + $0x68] sm:$0xff]  }
 0x283   :  { %3552 = vmatprep.subr.bf16.mxu1 %v5421_v2  ;;  %3675 = vmatprep.subr.bf16.mxu0 %v5424_v3  ;;  %v5478_v1 = vld [vmem:[#allocation11 + $0x28] sm:$0xff]   ;;  %v5479_v2 = vld [vmem:[#allocation11 + $0x70] sm:$0xff]  }
 0x284   :  { %v5480_v3 = vld [vmem:[#allocation11 + $0x30] sm:$0xff]  }
 0x286   :  { %3553 = vmatpush1.bf16.msra.mxu1 %v5419_v4  ;;  %3676 = vmatpush1.bf16.msra.mxu0 %v5422_v5  ;;  %v5481_v4 = vld [vmem:[#allocation11 + $0x78] sm:$0xff]  }
 0x287   :  { %3554 = vmatprep.subr.bf16.mxu1 %v5427_v8  ;;  %3677 = vmatprep.subr.bf16.mxu0 %v5430_v9  ;;  %v5482_v5 = vld [vmem:[#allocation11 + $0x38] sm:$0xff]   ;;  %v5483_v8 = vld [vmem:[#allocation11 + $0xc0] sm:$0xff]  }
 0x288   :  { %v2472_v9 = vld [vmem:[#allocation10] sm:$0xf] }
 0x28a   :  { %3555 = vmatpush1.bf16.msra.mxu1 %v5425_v10  ;;  %3678 = vmatpush1.bf16.msra.mxu0 %v5428_v11  ;;  %v2477_v10 = vrot.slane %v2472_v9, %v410_v35  ;;  %v2481_v11 = vrot.slane %v2472_v9, %v414_v14 }
 0x28b   :  { %3556 = vmatprep.subr.bf16.mxu1 %v5433_v12  ;;  %3679 = vmatprep.subr.bf16.mxu0 %v5436_v13  ;;  %v2489_v12 = vrot.slane %v2472_v9, %v422_v21  ;;  %v5486_v21 = vld [vmem:[#allocation11 + $0x88] sm:$0xff]  }
 0x28e   :  { %3557 = vmatpush1.bf16.msra.mxu1 %v5431_v15  ;;  %3680 = vmatpush1.bf16.msra.mxu0 %v5434_v16 }
 0x28f   :  { %3558 = vmatprep.subr.bf16.mxu1 %v5439_v17  ;;  %3681 = vmatprep.subr.bf16.mxu0 %v5442_v18 }
 0x292   :  { %3559 = vmatpush1.bf16.msra.mxu1 %v5437_v23  ;;  %3682 = vmatpush1.bf16.msra.mxu0 %v5440_v24 }
 0x293   :  { %3560 = vmatprep.subr.bf16.mxu1 %v5445_v25  ;;  %3683 = vmatprep.subr.bf16.mxu0 %v5448_v26 }
 0x294   :  { %v2261_v31 = vpop.f32.mrb[4].mxu0 }
 0x295   :  { %v4681_v33 = vadd.f32 %v2261_v31, %v427_v27  ;;  %v2263_v36 = vpop.f32.mrb[5].mxu0  ;;  %v5485_v31 = vld [vmem:[#allocation11 + $0xc8] sm:$0xff]  }
 0x296   :  { %v4682_v37 = vadd.f32 %v2263_v36, %v431_v28  ;;  %v2265_v34 = vpop.f32.mrb[6].mxu0  ;;  %3561 = vmatpush1.bf16.msra.mxu1 %v5443_v29  ;;  %3684 = vmatpush1.bf16.msra.mxu0 %v5446_v30  ;;  %v5484_v30 = vld [vmem:[#allocation11 + $0x80] sm:$0xff]   ;;  %v5489_v36 = vld [vmem:[#allocation11 + $0xd8] sm:$0xff]  }
 0x297   :  { %5507 = vtanh.f32 %v4681_v33  ;;  %v2266_v38 = vpop.f32.mrb[7].mxu0  ;;  %3562 = vmatprep.subr.bf16.mxu1 %v5451_v47  ;;  %3685 = vmatprep.subr.bf16.mxu0 %v5454_v7  ;;  %v5487_v7 = vld [vmem:[#allocation11 + $0xd0] sm:$0xff]   ;;  %v5491_v34 = vld [vmem:[#allocation11 + $0xe0] sm:$0xff]  }
 0x298   :  { %5509 = vtanh.f32 %v4682_v37  ;;  %v5488_v33 = vld [vmem:[#allocation11 + $0x90] sm:$0xff]   ;;  %v5490_v37 = vld [vmem:[#allocation11 + $0x98] sm:$0xff]   ;;  %v5492_v38 = vld [vmem:[#allocation11 + $0xa0] sm:$0xff]  }
 0x29a   :  { %3563 = vmatpush1.bf16.msra.mxu1 %v5449_v39  ;;  %3686 = vmatpush1.bf16.msra.mxu0 %v5452_v40  ;;  %v5493_v39 = vld [vmem:[#allocation11 + $0xe8] sm:$0xff]  }
 0x29b   :  { %3564 = vmatprep.subr.bf16.mxu1 %v5457_v51  ;;  %3687 = vmatprep.subr.bf16.mxu0 %v5460_v41  ;;  %v5494_v40 = vld [vmem:[#allocation11 + $0xa8] sm:$0xff]   ;;  %v2485_v51 = vrot.slane %v2472_v9, %v418_v20  ;;  %v5495_v41 = vld [vmem:[#allocation11 + $0xf0] sm:$0xff]   ;;  %v4598_v20 = vld [vmem:[#allocation13] ss:$0 sm:$0xff] }
 0x29e   :  { %3565 = vmatpush1.bf16.msra.mxu1 %v5455_v42  ;;  %3688 = vmatpush1.bf16.msra.mxu0 %v5458_v45  ;;  %v5496_v42 = vld [vmem:[#allocation11 + $0xb0] sm:$0xff]  }
 0x29f   :  { %3566 = vmatprep.subr.bf16.mxu1 %v5463_v46  ;;  %3689 = vmatprep.subr.bf16.mxu0 %v5466_v48  ;;  %v5497_v46 = vld [vmem:[#allocation11 + $0xf8] sm:$0xff]  }
 0x2a0   :  { %v5498_v48 = vld [vmem:[#allocation11 + $0xb8] sm:$0xff]  }
 0x2a1   :  { %v5508_v53 = vpop.eup %5507 }
 0x2a2   :  { %v5510_v54 = vpop.eup %5509  ;;  %3567 = vmatpush1.bf16.msra.mxu1 %v5461_v49  ;;  %3690 = vmatpush1.bf16.msra.mxu0 %v5464_v50  ;;  %v2278_v43 = vpack.c.bf16 %v5508_v53, %v5508_v53 }
 0x2a3   :  { %v2279_v55 = vpack.c.bf16 %v5510_v54, %v5510_v54  ;;  %4631 = vmatprep.subr.bf16.mxu1 %v5467_v52 }
 0x2a5   :  { %3568 = vmatprep.mubr.bf16.mxu1 %v2279_v55  ;;  %3691 = vmatprep.mubr.bf16.mxu0 %v2279_v55 }
 0x2a6   :  { %3569 = vmatmul.mubr.bf16.vlgmr.msra.gmra.mrb[8].mxu1 %v2278_v43  ;;  %3692 = vmatmul.mubr.bf16.vlgmr.msra.gmra.mrb[8].mxu0 %v2278_v43 }
 0x2a7   :  { %4632 = vmatpush3.bf16.msra.mxu1 %v5468_v56 }
 0x2a8   :  { %4633 = vmatprep.subr.bf16.mxu1 %v5469_v57 }
 0x2ab   :  { %4634 = vmatpush3.bf16.msra.mxu1 %v5470_v44 }
 0x2ac   :  { %4635 = vmatprep.subr.bf16.mxu1 %v5471_v58 }
 0x2af   :  { %4636 = vmatpush3.bf16.msra.mxu1 %v5472_v59 }
 0x2b0   :  { %4637 = vmatprep.subr.bf16.mxu1 %v5473_v60 }
 0x2b3   :  { %4638 = vmatpush3.bf16.msra.mxu1 %v5474_v61  ;;  %v5719_v61 = vmov 0  }
 0x2b4   :  { %4639 = vmatprep.subr.bf16.mxu1 %v5475_v62  ;;  %4739 = vset.pattern.permute.xlu0 %v5719_v61 }
 0x2b5   :  { %4740 = vset.pattern.permute.xlu1 %v5719_v61 }
 0x2b7   :  { %4640 = vmatpush3.bf16.msra.mxu1 %v5476_v63 }
 0x2b8   :  { %4641 = vmatprep.subr.bf16.mxu1 %v5477_v0 }
 0x2bb   :  { %4642 = vmatpush3.bf16.msra.mxu1 %v5478_v1 }
 0x2bc   :  { %4643 = vmatprep.subr.bf16.mxu1 %v5479_v2 }
 0x2bf   :  { %4644 = vmatpush3.bf16.msra.mxu1 %v5480_v3 }
 0x2c0   :  { %4645 = vmatprep.subr.bf16.mxu1 %v5481_v4 }
 0x2c3   :  { %4646 = vmatpush3.bf16.msra.mxu1 %v5482_v5 }
 0x2c4   :  { %4653 = vmatprep.subr.bf16.mxu1 %v5483_v8 }
 0x379   :  { %v3570_v13 = vpop.f32.mrb[8].mxu1  ;;  %v3693_v15 = vpop.f32.mrb[8].mxu0 }
 0x37a   :  { %v4683_v16 = vadd.f32 %v3570_v13, %v2477_v10  ;;  %v3572_v17 = vpop.f32.mrb[9].mxu1  ;;  %v3695_v18 = vpop.f32.mrb[9].mxu0  ;;  %v4685_v45 = vadd.f32 %v3693_v15, %v2485_v51 }
 0x37b   :  { %v4684_v19 = vadd.f32 %v3572_v17, %v2481_v11  ;;  %v4686_v22 = vadd.f32 %v3695_v18, %v2489_v12  ;;  %v3574_v23 = vpop.f32.mrb[10].mxu1  ;;  %v3697_v24 = vpop.f32.mrb[10].mxu0 }
 0x37c   :  { %v3700_v25 = vmax.f32 %v4683_v16, 0.0  ;;  %v3575_v26 = vpop.f32.mrb[11].mxu1  ;;  %v3698_v27 = vpop.f32.mrb[11].mxu0  ;;  %v3702_v49 = vmax.f32 %v4685_v45, 0.0 }
 0x37d   :  { %v3701_v28 = vmax.f32 %v4684_v19, 0.0  ;;  %v3703_v35 = vmax.f32 %v4686_v22, 0.0  ;;  %v4078_v26 = vand.u32 127, %v408_v6 }
 0x37e   :  { %v3704_v14 = vpack.c.bf16 %v3700_v25, %v3700_v25  ;;  %v3706_v50 = vpack.c.bf16 %v3702_v49, %v3702_v49 }
 0x37f   :  { %v3705_v29 = vpack.c.bf16 %v3701_v28, %v3701_v28  ;;  %v3707_v47 = vpack.c.bf16 %v3703_v35, %v3703_v35  ;;  %vm4080_vm0 = vcmp.eq.s32.totalorder %v4078_v26, 1  ;;  %vm4079_vm1 = vcmp.eq.s32.totalorder %v4078_v26, 0 }
 0x381   :  { %4003 = vmatprep.mubr.bf16.mxu1 %v3705_v29 }
 0x382   :  { %4004 = vmatmul.mubr.bf16.vlgmr.msra.gmra.mrb[12].mxu1 %v3704_v14 }
 0x383   :  { %4654 = vmatpush3.bf16.msra.mxu1 %v5484_v30  ;;  %4043 = vmatprep.mubr.bf16.mxu1 %v3707_v47 }
 0x384   :  { %4655 = vmatprep.subr.bf16.mxu1 %v5485_v31 }
 0x387   :  { %4656 = vmatpush3.bf16.msra.mxu1 %v5486_v21 }
 0x388   :  { %4657 = vmatprep.subr.bf16.mxu1 %v5487_v7 }
 0x38b   :  { %4658 = vmatpush3.bf16.msra.mxu1 %v5488_v33 }
 0x38c   :  { %4659 = vmatprep.subr.bf16.mxu1 %v5489_v36 }
 0x38f   :  { %4660 = vmatpush3.bf16.msra.mxu1 %v5490_v37 }
 0x390   :  { %4661 = vmatprep.subr.bf16.mxu1 %v5491_v34 }
 0x393   :  { %4662 = vmatpush3.bf16.msra.mxu1 %v5492_v38 }
 0x394   :  { %4663 = vmatprep.subr.bf16.mxu1 %v5493_v39 }
 0x397   :  { %4664 = vmatpush3.bf16.msra.mxu1 %v5494_v40 }
 0x398   :  { %4665 = vmatprep.subr.bf16.mxu1 %v5495_v41 }
 0x39b   :  { %4666 = vmatpush3.bf16.msra.mxu1 %v5496_v42 }
 0x39c   :  { %4667 = vmatprep.subr.bf16.mxu1 %v5497_v46 }
 0x39f   :  { %4668 = vmatpush3.bf16.msra.mxu1 %v5498_v48 }
 0x3a2   :  { %4044 = vmatmul.mubr.bf16.vlgmr.msra.gmra.mrb[16].mxu1 %v3706_v50 }
 0x455   :  { %v4647_v52 = vpop.f32.mrb[12].mxu1 }
 0x456   :  { %v4648_v53 = vpop.f32.mrb[13].mxu1 }
 0x457   :  { %v4649_v54 = vadd.f32 %v4648_v53, %v4647_v52  ;;  %v4650_v55 = vpop.f32.mrb[14].mxu1 }
 0x458   :  { %v4651_v32 = vpop.f32.mrb[15].mxu1 }
 0x459   :  { %v4006_v57 = vadd.f32 %v4649_v54, %v4598_v20 }
 0x475   :  { %v4669_v56 = vpop.f32.mrb[16].mxu1 }
 0x476   :  { %v4670_v43 = vpop.f32.mrb[17].mxu1 }
 0x477   :  { %v4671_v44 = vadd.f32 %v4670_v43, %v4669_v56  ;;  %v4672_v58 = vpop.f32.mrb[18].mxu1 }
 0x478   :  { %v4673_v59 = vpop.f32.mrb[19].mxu1 }
 0x479   :  { %v4046_v60 = vadd.f32 %v4671_v44, %v4006_v57 }
 0x47b   :  { %4052 = vrot.lane.b32.xlu0 %v4046_v60, %s5718_s6 }
 0x4ed   :  { %v4053_v62 = vpop.permute.xlu0 %4052 }
 0x4ee   :  { %v4055_v63 = vsub.f32 %v4046_v60, %v4053_v62 }
 0x4f0   :  { %v4056_v0 = vsub.f32 0.0, %v4055_v63  ;;  %v4068_v1 = vand.u32 2147483647, %v4055_v63  ;;  %v4067_v15 = vmax.f32 %v4055_v63, 0.0 }
 0x4f2   :  { %v4058_v2 = vand.u32 2147483647, %v4056_v0  ;;  %v4069_v3 = vsub.f32 0.0, %v4068_v1  ;;  %v4057_v19 = vmax.f32 %v4056_v0, 0.0 }
 0x4f4   :  { %v4059_v4 = vsub.f32 0.0, %v4058_v2  ;;  %v4070_v5 = vmul.f32 1.442695, %v4069_v3 }
 0x4f6   :  { %v4060_v8 = vmul.f32 1.442695, %v4059_v4  ;;  %5511 = vpow2.f32 %v4070_v5 }
 0x4f8   :  { %5513 = vpow2.f32 %v4060_v8 }
 0x500   :  { %v5512_v9 = vpop.eup %5511 }
 0x501   :  { %v4072_v10 = vadd.f32 1.0, %v5512_v9 }
 0x502   :  { %v5514_v11 = vpop.eup %5513 }
 0x503   :  { %5515 = vlog2.f32 %v4072_v10  ;;  %v4062_v12 = vadd.f32 1.0, %v5514_v11 }
 0x505   :  { %5517 = vlog2.f32 %v4062_v12 }
 0x50d   :  { %v5516_v13 = vpop.eup %5515 }
 0x50e   :  { %v4074_v16 = vmul.f32 0.6931472, %v5516_v13 }
 0x50f   :  { %v5518_v17 = vpop.eup %5517 }
 0x510   :  { %v4075_v18 = vadd.f32 %v4074_v16, %v4067_v15  ;;  %v4064_v22 = vmul.f32 0.6931472, %v5518_v17 }
 0x512   :  { %v4076_v23 = vsub.f32 0.0, %v4075_v18  ;;  %v4065_v24 = vadd.f32 %v4064_v22, %v4057_v19 }
 0x514   :  { %4083 = vperm.xlu0 %4739, %v4076_v23   ;;  %v4066_v25 = vsub.f32 0.0, %v4065_v24 }
 0x516   :  { %4089 = vperm.xlu1 %4740, %v4066_v25  }
 0x593   :  { %v4084_v27 = vpop.permute.xlu0 %4083 }
 0x594   :  { %v4086_v28 = vsel %vm4080_vm0, %v4084_v27, 0.0 }
 0x595   :  { %v4090_v35 = vpop.permute.xlu1 %4089 }
 0x596   :  { %v4092_v29 = vsel %vm4079_vm1, %v4090_v35, %v4086_v28 }
 0x597   :  { %4093 = vst [vmem:[#allocation14] sm:$0xff] %v4092_v29 }
 0x598   :  { %5684 = shalt.err (!%p5681_p4)
}
 0x599   :  { %s5685_s16 = scalar_lea.hbm %s5940_s7, 128 }
 0x59a   :  { %p5686_p5 = scmp.ne.s32.totalorder %s5940_s7, %s5685_s16  ;;  %p5689_p6 = scmp.lt.u32.totalorder %s5685_s16, %s5940_s7 }
 0x59c   :  { %p5691_p7 = pnand %p5689_p6, %p5686_p5 }
 0x59e   :  { %5694 = shalt.err (!%p5691_p7)
}
 0x59f   :  { %4103 = dma.vmem_to_hbm [thread:$0]  %s4101_s14, 128, %s5940_s7, [#allocation4]  }
 0x5a0   :  { %5703 = dma.done.wait [#allocation4], 128  }
 0x5a1   :  { %5704 = vsyncadd [#allocation4], 4294967168 }
 0x5a2   :  { %4107 = vsyncpa [#allocation3], 1 }
 0x5a3   :  { %4108 = vsyncpa [#allocation6], 1 }
 0x5a4   :  { %4109 = vsyncpa [#allocation9], 1 }
 0x5a5   :  { %4110 = vsyncpa [#allocation12], 1 }
 0x5a6   :  { %4111 = vsyncpa [#allocation4], 1 }

</bundles_post_ra>
